<compile_context>
chip_gen: v7x
topology: tpu7x:2x2x1
jax: 0.10.0
libtpu: 0.0.40
codegen_flags: <defaults>
</compile_context>

<pallas_src>
import math

import numpy as np
import jax
import jax.numpy as jnp
from jax.experimental import pallas as pl
from jax.experimental.pallas import tpu as pltpu

WINDOW_SIZE = 11
SIGMA = 1.5
C1 = 0.01 ** 2
C2 = 0.03 ** 2


def gaussian_1d(window_size: int, sigma: float) -> np.ndarray:
    g = np.array(
        [math.exp(-((x - window_size // 2) ** 2) / (2 * sigma ** 2))
         for x in range(window_size)],
        dtype=np.float32,
    )
    return g / g.sum()


def h_band_matrix(h_true: int, h_pad: int, g: np.ndarray) -> np.ndarray:
    """(h_pad, h_pad) banded Toeplitz K with K[i, p] = g[p - i + pad] restricted
    to the true image rows/cols; implements the zero-padded 1-D cross-correlation
    along H as a left matmul (matches conv2d zero padding)."""
    pad = len(g) // 2
    K = np.zeros((h_pad, h_pad), dtype=np.float32)
    for i in range(h_true):
        for p in range(h_true):
            d = p - i + pad
            if 0 <= d < len(g):
                K[i, p] = g[d]
    return K


def _pick_nb(n: int, w: int, target_lanes: int = 1024) -> int:
    """Images packed per grid step.  NB must divide N and give a 128-multiple
    lane extent (or cover the whole array).  Prefer ~target_lanes lanes, and
    mildly prefer >= 2 grid steps so the "parallel" axis can split across the
    two TensorCores of a v7x chip (irrelevant on 1-TC v5e/v6e)."""
    cands = []
    for d in range(1, n + 1):
        if n % d:
            continue
        lanes = d * w
        if lanes % 128 != 0 and d != n:
            continue
        cands.append(d)

    def score(d):
        lanes = d * w
        return (0 if lanes % 128 == 0 else 1,      # lane-aligned blocks first
                0 if (n // d) >= 2 else 1,          # v7x: let megacore split grid
                abs(lanes - target_lanes))

    return min(cands, key=score)


def _make_ssim_kernel(g: np.ndarray, w_img: int, h_img: int, h_pad: int, nbw: int):
    window_size = len(g)
    pad = window_size // 2
    gw = [float(v) for v in g]

    def kernel(x_ref, y_ref, kh_ref, psum_ref):
        x = x_ref[...].astype(jnp.float32)          # (h_pad, nbw), NB images on lanes
        y = y_ref[...].astype(jnp.float32)
        kh = kh_ref[...]                            # (h_pad, h_pad) f32 Toeplitz

        # Per-shift lane weights: g[k] where the shifted column stays inside its
        # own W-wide image, else 0 (conv2d zero padding).  Built once from a lane
        # iota and reused by all five blurred slabs.
        jcol = jax.lax.broadcasted_iota(jnp.int32, (1, nbw), 1) % w_img
        taps = []
        for k in range(window_size):
            s = k - pad
            if s == 0:
                continue
            wv = jnp.where((jcol + s >= 0) & (jcol + s < w_img),
                           jnp.float32(gw[k]), jnp.float32(0.0))
            taps.append(((-s) % nbw, wv))           # roll so out[:, j] = in[:, j + s]

        def blur2d(a):
            # W (lane) pass: masked lane rotations — XLU rolls + VPU FMAs.
            acc = a * jnp.float32(gw[pad])          # s == 0 tap is always in-bounds
            for amt, wv in taps:
                acc = acc + pltpu.roll(a, amt, axis=1) * wv
            # H (sublane) pass: one dense Toeplitz matmul on the MXU (f32).
            # TODO(synk): for very large H switch to bf16 operands / shift-adds.
            return jnp.dot(kh, acc, preferred_element_type=jnp.float32)

        mu1 = blur2d(x)
        mu2 = blur2d(y)
        e_xx = blur2d(x * x)
        e_yy = blur2d(y * y)
        e_xy = blur2d(x * y)

        mu1_sq = mu1 * mu1
        mu2_sq = mu2 * mu2
        mu1_mu2 = mu1 * mu2
        sigma1_sq = e_xx - mu1_sq
        sigma2_sq = e_yy - mu2_sq
        sigma12 = e_xy - mu1_mu2

        num = (2.0 * mu1_mu2 + C1) * (2.0 * sigma12 + C2)
        den = (mu1_sq + mu2_sq + C1) * (sigma1_sq + sigma2_sq + C2)
        ssim_map = num / den

        if h_pad != h_img:
            # Rows >= h_img are zero padding (their "SSIM" would be 1); drop them.
            rowmask = (jax.lax.broadcasted_iota(jnp.int32, (h_pad, 1), 0)
                       < h_img).astype(jnp.float32)
            ssim_map = ssim_map * rowmask

        # Per-step partial sum broadcast into one full (8,128) vreg: single
        # unmasked vst, keeps the grid axis fully parallel.
        psum_ref[...] = jnp.sum(ssim_map) + jnp.zeros(psum_ref.shape, jnp.float32)

    return kernel


def ssim_loss(pred, label, window_size=WINDOW_SIZE, size_average=True):
    """1 - SSIM(pred, label); matches SSIMLoss.forward with size_average=True.
    Note: C1/C2 assume data_range=1 (same as the PyTorch module)."""
    if pred.ndim == 3:
        pred = pred[:, None]
    if label.ndim == 3:
        label = label[:, None]
    # TODO(synk): size_average=False (per-image mean over dims [1,2,3]) not implemented.
    assert size_average, "only size_average=True is implemented"

    B, C, H, W = pred.shape
    N = B * C
    g = gaussian_1d(window_size, SIGMA)
    H_pad = ((H + 7) // 8) * 8                       # sublane-tile aligned rows
    itemsize = np.dtype(pred.dtype).itemsize

    # Generation-aware VMEM budget (v7x: 64 MiB physical, v5e/v6e: 128 MiB).
    try:
        vmem_cap = int(pltpu.get_tpu_info().vmem_capacity_bytes)
    except Exception:
        vmem_cap = 64 * 1024 * 1024
    budget = min(40 * 1024 * 1024, int(0.6 * vmem_cap))

    def est_bytes(nb):
        nbw_ = nb * W
        return (2 * 2 * H_pad * nbw_ * itemsize      # x, y blocks, double-buffered
                + 2 * H_pad * H_pad * 4              # Kh constant (double-buffered; tiny)
                + 24 * H_pad * nbw_ * 4              # in-kernel f32 temporaries
                + 2 * 8 * 128 * 4)                   # output block

    NB = _pick_nb(N, W)
    while est_bytes(NB) > budget:                    # shrink NB rather than overflow VMEM
        smaller = [d for d in range(1, NB) if N % d == 0 and (d * W) % 128 == 0]
        if not smaller:
            break
        NB = max(smaller)
    G = N // NB
    NBW = NB * W

    kh = jnp.asarray(h_band_matrix(H, H_pad, g))     # (H_pad, H_pad) f32, KB-scale

    # Lane-dense packing: images side-by-side along the last axis (layout
    # plumbing only; dtype stays native, the kernel upcasts per tile).
    x = jnp.transpose(pred.reshape(N, H, W), (1, 0, 2)).reshape(H, N * W)
    y = jnp.transpose(label.reshape(N, H, W), (1, 0, 2)).reshape(H, N * W)
    if H_pad != H:
        x = jnp.concatenate([x, jnp.zeros((H_pad - H, N * W), x.dtype)], axis=0)
        y = jnp.concatenate([y, jnp.zeros((H_pad - H, N * W), y.dtype)], axis=0)

    vmem_limit = int(min(max(2 * est_bytes(NB), 16 * 1024 * 1024), budget))

    kernel = _make_ssim_kernel(g, W, H, H_pad, NBW)

    psums = pl.pallas_call(
        kernel,
        out_shape=jax.ShapeDtypeStruct((G, 8, 128), jnp.float32),
        grid_spec=pltpu.PrefetchScalarGridSpec(
            num_scalar_prefetch=0,
            grid=(G,),
            in_specs=[
                pl.BlockSpec((H_pad, NBW), lambda i: (0, i)),
                pl.BlockSpec((H_pad, NBW), lambda i: (0, i)),
                # Grid-invariant Toeplitz constant (only H_pad^2 f32 now).
                pl.BlockSpec((H_pad, H_pad), lambda i: (0, 0)),
            ],
            out_specs=pl.BlockSpec((1, 8, 128), lambda i: (i, 0, 0)),
        ),
        compiler_params=pltpu.CompilerParams(
            dimension_semantics=("parallel",),
            vmem_limit_bytes=vmem_limit),
    )(x, y, kh)

    # Final reduction outside the kernel, using the true element count.
    per_chunk = psums[:, 0, 0]                       # (G,)
    total = jnp.float32(N * H * W)
    return 1.0 - jnp.sum(per_chunk) / total


def ssim_loss_ref(pred, label, window_size=WINDOW_SIZE):
    """Pure-JAX reference matching the PyTorch module (size_average=True)."""
    B, C, H, W = pred.shape
    pad = window_size // 2
    g = jnp.asarray(gaussian_1d(window_size, SIGMA))
    win2d = jnp.outer(g, g)[None, None]                      # (1,1,ws,ws)
    w = jnp.tile(win2d, (C, 1, 1, 1)).astype(jnp.float32)    # (C,1,ws,ws)

    def conv(x):
        return jax.lax.conv_general_dilated(
            x, w, window_strides=(1, 1),
            padding=[(pad, pad), (pad, pad)],
            feature_group_count=C,
            dimension_numbers=("NCHW", "OIHW", "NCHW"),
            precision=jax.lax.Precision.HIGHEST)

    mu1, mu2 = conv(pred), conv(label)
    mu1_sq, mu2_sq, mu1_mu2 = mu1 ** 2, mu2 ** 2, mu1 * mu2
    sigma1_sq = conv(pred * pred) - mu1_sq
    sigma2_sq = conv(label * label) - mu2_sq
    sigma12 = conv(pred * label) - mu1_mu2
    ssim_map = ((2 * mu1_mu2 + C1) * (2 * sigma12 + C2)) / (
        (mu1_sq + mu2_sq + C1) * (sigma1_sq + sigma2_sq + C2))
    return 1.0 - jnp.mean(ssim_map)


if __name__ == "__main__":
    key = jax.random.PRNGKey(0)
    k1, k2 = jax.random.split(key)
    B, C, H, W = 2, 4, 16, 16
    pred = jax.random.uniform(k1, (B, C, H, W), dtype=jnp.float32)
    label = jax.random.uniform(k2, (B, C, H, W), dtype=jnp.float32)

    loss = ssim_loss(pred, label)
    jax.block_until_ready(loss)

    ref = ssim_loss_ref(pred, label)
    np.testing.assert_allclose(np.asarray(loss), np.asarray(ref),
                               rtol=1e-3, atol=1e-3)
    print("KERNEL_OK")
</pallas_src>

<mosaic_0001>
module attributes {stable_mosaic.version = 11 : i64} {
  func.func @kernel(%arg0: i32, %arg1: memref<16x128xf32, #tpu.memory_space<vmem>>, %arg2: memref<16x128xf32, #tpu.memory_space<vmem>>, %arg3: memref<16x16xf32, #tpu.memory_space<vmem>>, %arg4: memref<1x8x128xf32, #tpu.memory_space<vmem>>) attributes {dimension_semantics = [#tpu.dimension_semantics<parallel>], iteration_bounds = array<i64: 1>, scalar_prefetch = 0 : i64, scratch_operands = 0 : i64, tpu.core_type = #tpu.core_type<tc>, window_params = [{transform_indices = @transform_0, window_bounds = array<i64: 16, 128>}, {transform_indices = @transform_1, window_bounds = array<i64: 16, 128>}, {pipeline_mode = #tpu.pipeline_mode<synchronous>, transform_indices = @transform_2, window_bounds = array<i64: 16, 16>}, {transform_indices = @transform_3, window_bounds = array<i64: 1, 8, 128>}]} {
    %c0 = arith.constant 0 : index
    %c0_0 = arith.constant 0 : index
    %0 = vector.load %arg1[%c0, %c0_0] : memref<16x128xf32, #tpu.memory_space<vmem>>, vector<16x128xf32>
    %c0_1 = arith.constant 0 : index
    %c0_2 = arith.constant 0 : index
    %1 = vector.load %arg2[%c0_1, %c0_2] : memref<16x128xf32, #tpu.memory_space<vmem>>, vector<16x128xf32>
    %c0_3 = arith.constant 0 : index
    %c0_4 = arith.constant 0 : index
    %2 = vector.load %arg3[%c0_3, %c0_4] : memref<16x16xf32, #tpu.memory_space<vmem>>, vector<16x16xf32>
    %3 = tpu.iota {dimensions = array<i32: 1>} : vector<1x128xi32>
    %c16_i32 = arith.constant 16 : i32
    %c0_i32 = arith.constant 0 : i32
    %4 = arith.cmpi eq, %c16_i32, %c0_i32 : i32
    %c1_i32 = arith.constant 1 : i32
    %5 = arith.select %4, %c1_i32, %c16_i32 : i32
    %6 = vector.broadcast %5 : i32 to vector<1x128xi32>
    %7 = arith.remsi %3, %6 : vector<1x128xi32>
    %c0_i32_5 = arith.constant 0 : i32
    %8 = vector.broadcast %c0_i32_5 : i32 to vector<1x128xi32>
    %9 = arith.cmpi ne, %7, %8 : vector<1x128xi32>
    %c0_i32_6 = arith.constant 0 : i32
    %10 = vector.broadcast %c0_i32_6 : i32 to vector<1x128xi32>
    %11 = arith.cmpi slt, %7, %10 : vector<1x128xi32>
    %c0_i32_7 = arith.constant 0 : i32
    %12 = arith.cmpi slt, %5, %c0_i32_7 : i32
    %13 = vector.broadcast %12 : i1 to vector<1x128xi1>
    %14 = vector.broadcast %13 : vector<1x128xi1> to vector<1x128xi1>
    %15 = arith.xori %11, %14 : vector<1x128xi1>
    %16 = arith.andi %15, %9 : vector<1x128xi1>
    %17 = vector.broadcast %5 : i32 to vector<1x128xi32>
    %18 = arith.addi %7, %17 : vector<1x128xi32>
    %19 = arith.select %16, %18, %7 : vector<1x128xi1>, vector<1x128xi32>
    %c-5_i32 = arith.constant -5 : i32
    %20 = vector.broadcast %c-5_i32 : i32 to vector<1x128xi32>
    %21 = arith.addi %19, %20 : vector<1x128xi32>
    %c0_i32_8 = arith.constant 0 : i32
    %22 = vector.broadcast %c0_i32_8 : i32 to vector<1x128xi32>
    %23 = arith.cmpi sge, %21, %22 : vector<1x128xi32>
    %c-5_i32_9 = arith.constant -5 : i32
    %24 = vector.broadcast %c-5_i32_9 : i32 to vector<1x128xi32>
    %25 = arith.addi %19, %24 : vector<1x128xi32>
    %c16_i32_10 = arith.constant 16 : i32
    %26 = vector.broadcast %c16_i32_10 : i32 to vector<1x128xi32>
    %27 = arith.cmpi slt, %25, %26 : vector<1x128xi32>
    %28 = arith.andi %23, %27 : vector<1x128xi1>
    %cst = arith.constant 0.00102838024 : f32
    %cst_11 = arith.constant 0.000000e+00 : f32
    %29 = vector.broadcast %cst : f32 to vector<1x128xf32>
    %30 = vector.broadcast %cst_11 : f32 to vector<1x128xf32>
    %31 = arith.select %28, %29, %30 : vector<1x128xi1>, vector<1x128xf32>
    %c-4_i32 = arith.constant -4 : i32
    %32 = vector.broadcast %c-4_i32 : i32 to vector<1x128xi32>
    %33 = arith.addi %19, %32 : vector<1x128xi32>
    %c0_i32_12 = arith.constant 0 : i32
    %34 = vector.broadcast %c0_i32_12 : i32 to vector<1x128xi32>
    %35 = arith.cmpi sge, %33, %34 : vector<1x128xi32>
    %c-4_i32_13 = arith.constant -4 : i32
    %36 = vector.broadcast %c-4_i32_13 : i32 to vector<1x128xi32>
    %37 = arith.addi %19, %36 : vector<1x128xi32>
    %c16_i32_14 = arith.constant 16 : i32
    %38 = vector.broadcast %c16_i32_14 : i32 to vector<1x128xi32>
    %39 = arith.cmpi slt, %37, %38 : vector<1x128xi32>
    %40 = arith.andi %35, %39 : vector<1x128xi1>
    %cst_15 = arith.constant 0.00759875868 : f32
    %cst_16 = arith.constant 0.000000e+00 : f32
    %41 = vector.broadcast %cst_15 : f32 to vector<1x128xf32>
    %42 = vector.broadcast %cst_16 : f32 to vector<1x128xf32>
    %43 = arith.select %40, %41, %42 : vector<1x128xi1>, vector<1x128xf32>
    %c-3_i32 = arith.constant -3 : i32
    %44 = vector.broadcast %c-3_i32 : i32 to vector<1x128xi32>
    %45 = arith.addi %19, %44 : vector<1x128xi32>
    %c0_i32_17 = arith.constant 0 : i32
    %46 = vector.broadcast %c0_i32_17 : i32 to vector<1x128xi32>
    %47 = arith.cmpi sge, %45, %46 : vector<1x128xi32>
    %c-3_i32_18 = arith.constant -3 : i32
    %48 = vector.broadcast %c-3_i32_18 : i32 to vector<1x128xi32>
    %49 = arith.addi %19, %48 : vector<1x128xi32>
    %c16_i32_19 = arith.constant 16 : i32
    %50 = vector.broadcast %c16_i32_19 : i32 to vector<1x128xi32>
    %51 = arith.cmpi slt, %49, %50 : vector<1x128xi32>
    %52 = arith.andi %47, %51 : vector<1x128xi1>
    %cst_20 = arith.constant 0.0360007733 : f32
    %cst_21 = arith.constant 0.000000e+00 : f32
    %53 = vector.broadcast %cst_20 : f32 to vector<1x128xf32>
    %54 = vector.broadcast %cst_21 : f32 to vector<1x128xf32>
    %55 = arith.select %52, %53, %54 : vector<1x128xi1>, vector<1x128xf32>
    %c-2_i32 = arith.constant -2 : i32
    %56 = vector.broadcast %c-2_i32 : i32 to vector<1x128xi32>
    %57 = arith.addi %19, %56 : vector<1x128xi32>
    %c0_i32_22 = arith.constant 0 : i32
    %58 = vector.broadcast %c0_i32_22 : i32 to vector<1x128xi32>
    %59 = arith.cmpi sge, %57, %58 : vector<1x128xi32>
    %c-2_i32_23 = arith.constant -2 : i32
    %60 = vector.broadcast %c-2_i32_23 : i32 to vector<1x128xi32>
    %61 = arith.addi %19, %60 : vector<1x128xi32>
    %c16_i32_24 = arith.constant 16 : i32
    %62 = vector.broadcast %c16_i32_24 : i32 to vector<1x128xi32>
    %63 = arith.cmpi slt, %61, %62 : vector<1x128xi32>
    %64 = arith.andi %59, %63 : vector<1x128xi1>
    %cst_25 = arith.constant 0.109360695 : f32
    %cst_26 = arith.constant 0.000000e+00 : f32
    %65 = vector.broadcast %cst_25 : f32 to vector<1x128xf32>
    %66 = vector.broadcast %cst_26 : f32 to vector<1x128xf32>
    %67 = arith.select %64, %65, %66 : vector<1x128xi1>, vector<1x128xf32>
    %c-1_i32 = arith.constant -1 : i32
    %68 = vector.broadcast %c-1_i32 : i32 to vector<1x128xi32>
    %69 = arith.addi %19, %68 : vector<1x128xi32>
    %c0_i32_27 = arith.constant 0 : i32
    %70 = vector.broadcast %c0_i32_27 : i32 to vector<1x128xi32>
    %71 = arith.cmpi sge, %69, %70 : vector<1x128xi32>
    %c-1_i32_28 = arith.constant -1 : i32
    %72 = vector.broadcast %c-1_i32_28 : i32 to vector<1x128xi32>
    %73 = arith.addi %19, %72 : vector<1x128xi32>
    %c16_i32_29 = arith.constant 16 : i32
    %74 = vector.broadcast %c16_i32_29 : i32 to vector<1x128xi32>
    %75 = arith.cmpi slt, %73, %74 : vector<1x128xi32>
    %76 = arith.andi %71, %75 : vector<1x128xi1>
    %cst_30 = arith.constant 0.213005543 : f32
    %cst_31 = arith.constant 0.000000e+00 : f32
    %77 = vector.broadcast %cst_30 : f32 to vector<1x128xf32>
    %78 = vector.broadcast %cst_31 : f32 to vector<1x128xf32>
    %79 = arith.select %76, %77, %78 : vector<1x128xi1>, vector<1x128xf32>
    %c1_i32_32 = arith.constant 1 : i32
    %80 = vector.broadcast %c1_i32_32 : i32 to vector<1x128xi32>
    %81 = arith.addi %19, %80 : vector<1x128xi32>
    %c0_i32_33 = arith.constant 0 : i32
    %82 = vector.broadcast %c0_i32_33 : i32 to vector<1x128xi32>
    %83 = arith.cmpi sge, %81, %82 : vector<1x128xi32>
    %c1_i32_34 = arith.constant 1 : i32
    %84 = vector.broadcast %c1_i32_34 : i32 to vector<1x128xi32>
    %85 = arith.addi %19, %84 : vector<1x128xi32>
    %c16_i32_35 = arith.constant 16 : i32
    %86 = vector.broadcast %c16_i32_35 : i32 to vector<1x128xi32>
    %87 = arith.cmpi slt, %85, %86 : vector<1x128xi32>
    %88 = arith.andi %83, %87 : vector<1x128xi1>
    %cst_36 = arith.constant 0.213005543 : f32
    %cst_37 = arith.constant 0.000000e+00 : f32
    %89 = vector.broadcast %cst_36 : f32 to vector<1x128xf32>
    %90 = vector.broadcast %cst_37 : f32 to vector<1x128xf32>
    %91 = arith.select %88, %89, %90 : vector<1x128xi1>, vector<1x128xf32>
    %c2_i32 = arith.constant 2 : i32
    %92 = vector.broadcast %c2_i32 : i32 to vector<1x128xi32>
    %93 = arith.addi %19, %92 : vector<1x128xi32>
    %c0_i32_38 = arith.constant 0 : i32
    %94 = vector.broadcast %c0_i32_38 : i32 to vector<1x128xi32>
    %95 = arith.cmpi sge, %93, %94 : vector<1x128xi32>
    %c2_i32_39 = arith.constant 2 : i32
    %96 = vector.broadcast %c2_i32_39 : i32 to vector<1x128xi32>
    %97 = arith.addi %19, %96 : vector<1x128xi32>
    %c16_i32_40 = arith.constant 16 : i32
    %98 = vector.broadcast %c16_i32_40 : i32 to vector<1x128xi32>
    %99 = arith.cmpi slt, %97, %98 : vector<1x128xi32>
    %100 = arith.andi %95, %99 : vector<1x128xi1>
    %cst_41 = arith.constant 0.109360695 : f32
    %cst_42 = arith.constant 0.000000e+00 : f32
    %101 = vector.broadcast %cst_41 : f32 to vector<1x128xf32>
    %102 = vector.broadcast %cst_42 : f32 to vector<1x128xf32>
    %103 = arith.select %100, %101, %102 : vector<1x128xi1>, vector<1x128xf32>
    %c3_i32 = arith.constant 3 : i32
    %104 = vector.broadcast %c3_i32 : i32 to vector<1x128xi32>
    %105 = arith.addi %19, %104 : vector<1x128xi32>
    %c0_i32_43 = arith.constant 0 : i32
    %106 = vector.broadcast %c0_i32_43 : i32 to vector<1x128xi32>
    %107 = arith.cmpi sge, %105, %106 : vector<1x128xi32>
    %c3_i32_44 = arith.constant 3 : i32
    %108 = vector.broadcast %c3_i32_44 : i32 to vector<1x128xi32>
    %109 = arith.addi %19, %108 : vector<1x128xi32>
    %c16_i32_45 = arith.constant 16 : i32
    %110 = vector.broadcast %c16_i32_45 : i32 to vector<1x128xi32>
    %111 = arith.cmpi slt, %109, %110 : vector<1x128xi32>
    %112 = arith.andi %107, %111 : vector<1x128xi1>
    %cst_46 = arith.constant 0.0360007733 : f32
    %cst_47 = arith.constant 0.000000e+00 : f32
    %113 = vector.broadcast %cst_46 : f32 to vector<1x128xf32>
    %114 = vector.broadcast %cst_47 : f32 to vector<1x128xf32>
    %115 = arith.select %112, %113, %114 : vector<1x128xi1>, vector<1x128xf32>
    %c4_i32 = arith.constant 4 : i32
    %116 = vector.broadcast %c4_i32 : i32 to vector<1x128xi32>
    %117 = arith.addi %19, %116 : vector<1x128xi32>
    %c0_i32_48 = arith.constant 0 : i32
    %118 = vector.broadcast %c0_i32_48 : i32 to vector<1x128xi32>
    %119 = arith.cmpi sge, %117, %118 : vector<1x128xi32>
    %c4_i32_49 = arith.constant 4 : i32
    %120 = vector.broadcast %c4_i32_49 : i32 to vector<1x128xi32>
    %121 = arith.addi %19, %120 : vector<1x128xi32>
    %c16_i32_50 = arith.constant 16 : i32
    %122 = vector.broadcast %c16_i32_50 : i32 to vector<1x128xi32>
    %123 = arith.cmpi slt, %121, %122 : vector<1x128xi32>
    %124 = arith.andi %119, %123 : vector<1x128xi1>
    %cst_51 = arith.constant 0.00759875868 : f32
    %cst_52 = arith.constant 0.000000e+00 : f32
    %125 = vector.broadcast %cst_51 : f32 to vector<1x128xf32>
    %126 = vector.broadcast %cst_52 : f32 to vector<1x128xf32>
    %127 = arith.select %124, %125, %126 : vector<1x128xi1>, vector<1x128xf32>
    %c5_i32 = arith.constant 5 : i32
    %128 = vector.broadcast %c5_i32 : i32 to vector<1x128xi32>
    %129 = arith.addi %19, %128 : vector<1x128xi32>
    %c0_i32_53 = arith.constant 0 : i32
    %130 = vector.broadcast %c0_i32_53 : i32 to vector<1x128xi32>
    %131 = arith.cmpi sge, %129, %130 : vector<1x128xi32>
    %c5_i32_54 = arith.constant 5 : i32
    %132 = vector.broadcast %c5_i32_54 : i32 to vector<1x128xi32>
    %133 = arith.addi %19, %132 : vector<1x128xi32>
    %c16_i32_55 = arith.constant 16 : i32
    %134 = vector.broadcast %c16_i32_55 : i32 to vector<1x128xi32>
    %135 = arith.cmpi slt, %133, %134 : vector<1x128xi32>
    %136 = arith.andi %131, %135 : vector<1x128xi1>
    %cst_56 = arith.constant 0.00102838024 : f32
    %cst_57 = arith.constant 0.000000e+00 : f32
    %137 = vector.broadcast %cst_56 : f32 to vector<1x128xf32>
    %138 = vector.broadcast %cst_57 : f32 to vector<1x128xf32>
    %139 = arith.select %136, %137, %138 : vector<1x128xi1>, vector<1x128xf32>
    %cst_58 = arith.constant 0.266011745 : f32
    %140 = vector.broadcast %cst_58 : f32 to vector<16x128xf32>
    %141 = arith.mulf %0, %140 : vector<16x128xf32>
    %c5_i32_59 = arith.constant 5 : i32
    %142 = tpu.dynamic_rotate %0 by %c5_i32_59 dim 1 : vector<16x128xf32>, i32 -> vector<16x128xf32>
    %143 = vector.broadcast %31 : vector<1x128xf32> to vector<16x128xf32>
    %144 = arith.mulf %142, %143 : vector<16x128xf32>
    %145 = arith.addf %141, %144 : vector<16x128xf32>
    %c4_i32_60 = arith.constant 4 : i32
    %146 = tpu.dynamic_rotate %0 by %c4_i32_60 dim 1 : vector<16x128xf32>, i32 -> vector<16x128xf32>
    %147 = vector.broadcast %43 : vector<1x128xf32> to vector<16x128xf32>
    %148 = arith.mulf %146, %147 : vector<16x128xf32>
    %149 = arith.addf %145, %148 : vector<16x128xf32>
    %c3_i32_61 = arith.constant 3 : i32
    %150 = tpu.dynamic_rotate %0 by %c3_i32_61 dim 1 : vector<16x128xf32>, i32 -> vector<16x128xf32>
    %151 = vector.broadcast %55 : vector<1x128xf32> to vector<16x128xf32>
    %152 = arith.mulf %150, %151 : vector<16x128xf32>
    %153 = arith.addf %149, %152 : vector<16x128xf32>
    %c2_i32_62 = arith.constant 2 : i32
    %154 = tpu.dynamic_rotate %0 by %c2_i32_62 dim 1 : vector<16x128xf32>, i32 -> vector<16x128xf32>
    %155 = vector.broadcast %67 : vector<1x128xf32> to vector<16x128xf32>
    %156 = arith.mulf %154, %155 : vector<16x128xf32>
    %157 = arith.addf %153, %156 : vector<16x128xf32>
    %c1_i32_63 = arith.constant 1 : i32
    %158 = tpu.dynamic_rotate %0 by %c1_i32_63 dim 1 : vector<16x128xf32>, i32 -> vector<16x128xf32>
    %159 = vector.broadcast %79 : vector<1x128xf32> to vector<16x128xf32>
    %160 = arith.mulf %158, %159 : vector<16x128xf32>
    %161 = arith.addf %157, %160 : vector<16x128xf32>
    %c127_i32 = arith.constant 127 : i32
    %162 = tpu.dynamic_rotate %0 by %c127_i32 dim 1 : vector<16x128xf32>, i32 -> vector<16x128xf32>
    %163 = vector.broadcast %91 : vector<1x128xf32> to vector<16x128xf32>
    %164 = arith.mulf %162, %163 : vector<16x128xf32>
    %165 = arith.addf %161, %164 : vector<16x128xf32>
    %c126_i32 = arith.constant 126 : i32
    %166 = tpu.dynamic_rotate %0 by %c126_i32 dim 1 : vector<16x128xf32>, i32 -> vector<16x128xf32>
    %167 = vector.broadcast %103 : vector<1x128xf32> to vector<16x128xf32>
    %168 = arith.mulf %166, %167 : vector<16x128xf32>
    %169 = arith.addf %165, %168 : vector<16x128xf32>
    %c125_i32 = arith.constant 125 : i32
    %170 = tpu.dynamic_rotate %0 by %c125_i32 dim 1 : vector<16x128xf32>, i32 -> vector<16x128xf32>
    %171 = vector.broadcast %115 : vector<1x128xf32> to vector<16x128xf32>
    %172 = arith.mulf %170, %171 : vector<16x128xf32>
    %173 = arith.addf %169, %172 : vector<16x128xf32>
    %c124_i32 = arith.constant 124 : i32
    %174 = tpu.dynamic_rotate %0 by %c124_i32 dim 1 : vector<16x128xf32>, i32 -> vector<16x128xf32>
    %175 = vector.broadcast %127 : vector<1x128xf32> to vector<16x128xf32>
    %176 = arith.mulf %174, %175 : vector<16x128xf32>
    %177 = arith.addf %173, %176 : vector<16x128xf32>
    %c123_i32 = arith.constant 123 : i32
    %178 = tpu.dynamic_rotate %0 by %c123_i32 dim 1 : vector<16x128xf32>, i32 -> vector<16x128xf32>
    %179 = vector.broadcast %139 : vector<1x128xf32> to vector<16x128xf32>
    %180 = arith.mulf %178, %179 : vector<16x128xf32>
    %181 = arith.addf %177, %180 : vector<16x128xf32>
    %cst_64 = arith.constant dense<0.000000e+00> : vector<16x128xf32>
    %182 = tpu.matmul %2, %181, %cst_64 {dimension_numbers = #tpu.dot_dimension_numbers<[1], [0], [0], [1], [0, 0, 1, 1], [], []>} : vector<16x16xf32>, vector<16x128xf32>, vector<16x128xf32> -> vector<16x128xf32>
    %cst_65 = arith.constant 0.266011745 : f32
    %183 = vector.broadcast %cst_65 : f32 to vector<16x128xf32>
    %184 = arith.mulf %1, %183 : vector<16x128xf32>
    %c5_i32_66 = arith.constant 5 : i32
    %185 = tpu.dynamic_rotate %1 by %c5_i32_66 dim 1 : vector<16x128xf32>, i32 -> vector<16x128xf32>
    %186 = vector.broadcast %31 : vector<1x128xf32> to vector<16x128xf32>
    %187 = arith.mulf %185, %186 : vector<16x128xf32>
    %188 = arith.addf %184, %187 : vector<16x128xf32>
    %c4_i32_67 = arith.constant 4 : i32
    %189 = tpu.dynamic_rotate %1 by %c4_i32_67 dim 1 : vector<16x128xf32>, i32 -> vector<16x128xf32>
    %190 = vector.broadcast %43 : vector<1x128xf32> to vector<16x128xf32>
    %191 = arith.mulf %189, %190 : vector<16x128xf32>
    %192 = arith.addf %188, %191 : vector<16x128xf32>
    %c3_i32_68 = arith.constant 3 : i32
    %193 = tpu.dynamic_rotate %1 by %c3_i32_68 dim 1 : vector<16x128xf32>, i32 -> vector<16x128xf32>
    %194 = vector.broadcast %55 : vector<1x128xf32> to vector<16x128xf32>
    %195 = arith.mulf %193, %194 : vector<16x128xf32>
    %196 = arith.addf %192, %195 : vector<16x128xf32>
    %c2_i32_69 = arith.constant 2 : i32
    %197 = tpu.dynamic_rotate %1 by %c2_i32_69 dim 1 : vector<16x128xf32>, i32 -> vector<16x128xf32>
    %198 = vector.broadcast %67 : vector<1x128xf32> to vector<16x128xf32>
    %199 = arith.mulf %197, %198 : vector<16x128xf32>
    %200 = arith.addf %196, %199 : vector<16x128xf32>
    %c1_i32_70 = arith.constant 1 : i32
    %201 = tpu.dynamic_rotate %1 by %c1_i32_70 dim 1 : vector<16x128xf32>, i32 -> vector<16x128xf32>
    %202 = vector.broadcast %79 : vector<1x128xf32> to vector<16x128xf32>
    %203 = arith.mulf %201, %202 : vector<16x128xf32>
    %204 = arith.addf %200, %203 : vector<16x128xf32>
    %c127_i32_71 = arith.constant 127 : i32
    %205 = tpu.dynamic_rotate %1 by %c127_i32_71 dim 1 : vector<16x128xf32>, i32 -> vector<16x128xf32>
    %206 = vector.broadcast %91 : vector<1x128xf32> to vector<16x128xf32>
    %207 = arith.mulf %205, %206 : vector<16x128xf32>
    %208 = arith.addf %204, %207 : vector<16x128xf32>
    %c126_i32_72 = arith.constant 126 : i32
    %209 = tpu.dynamic_rotate %1 by %c126_i32_72 dim 1 : vector<16x128xf32>, i32 -> vector<16x128xf32>
    %210 = vector.broadcast %103 : vector<1x128xf32> to vector<16x128xf32>
    %211 = arith.mulf %209, %210 : vector<16x128xf32>
    %212 = arith.addf %208, %211 : vector<16x128xf32>
    %c125_i32_73 = arith.constant 125 : i32
    %213 = tpu.dynamic_rotate %1 by %c125_i32_73 dim 1 : vector<16x128xf32>, i32 -> vector<16x128xf32>
    %214 = vector.broadcast %115 : vector<1x128xf32> to vector<16x128xf32>
    %215 = arith.mulf %213, %214 : vector<16x128xf32>
    %216 = arith.addf %212, %215 : vector<16x128xf32>
    %c124_i32_74 = arith.constant 124 : i32
    %217 = tpu.dynamic_rotate %1 by %c124_i32_74 dim 1 : vector<16x128xf32>, i32 -> vector<16x128xf32>
    %218 = vector.broadcast %127 : vector<1x128xf32> to vector<16x128xf32>
    %219 = arith.mulf %217, %218 : vector<16x128xf32>
    %220 = arith.addf %216, %219 : vector<16x128xf32>
    %c123_i32_75 = arith.constant 123 : i32
    %221 = tpu.dynamic_rotate %1 by %c123_i32_75 dim 1 : vector<16x128xf32>, i32 -> vector<16x128xf32>
    %222 = vector.broadcast %139 : vector<1x128xf32> to vector<16x128xf32>
    %223 = arith.mulf %221, %222 : vector<16x128xf32>
    %224 = arith.addf %220, %223 : vector<16x128xf32>
    %cst_76 = arith.constant dense<0.000000e+00> : vector<16x128xf32>
    %225 = tpu.matmul %2, %224, %cst_76 {dimension_numbers = #tpu.dot_dimension_numbers<[1], [0], [0], [1], [0, 0, 1, 1], [], []>} : vector<16x16xf32>, vector<16x128xf32>, vector<16x128xf32> -> vector<16x128xf32>
    %226 = arith.mulf %0, %0 : vector<16x128xf32>
    %cst_77 = arith.constant 0.266011745 : f32
    %227 = vector.broadcast %cst_77 : f32 to vector<16x128xf32>
    %228 = arith.mulf %226, %227 : vector<16x128xf32>
    %c5_i32_78 = arith.constant 5 : i32
    %229 = tpu.dynamic_rotate %226 by %c5_i32_78 dim 1 : vector<16x128xf32>, i32 -> vector<16x128xf32>
    %230 = vector.broadcast %31 : vector<1x128xf32> to vector<16x128xf32>
    %231 = arith.mulf %229, %230 : vector<16x128xf32>
    %232 = arith.addf %228, %231 : vector<16x128xf32>
    %c4_i32_79 = arith.constant 4 : i32
    %233 = tpu.dynamic_rotate %226 by %c4_i32_79 dim 1 : vector<16x128xf32>, i32 -> vector<16x128xf32>
    %234 = vector.broadcast %43 : vector<1x128xf32> to vector<16x128xf32>
    %235 = arith.mulf %233, %234 : vector<16x128xf32>
    %236 = arith.addf %232, %235 : vector<16x128xf32>
    %c3_i32_80 = arith.constant 3 : i32
    %237 = tpu.dynamic_rotate %226 by %c3_i32_80 dim 1 : vector<16x128xf32>, i32 -> vector<16x128xf32>
    %238 = vector.broadcast %55 : vector<1x128xf32> to vector<16x128xf32>
    %239 = arith.mulf %237, %238 : vector<16x128xf32>
    %240 = arith.addf %236, %239 : vector<16x128xf32>
    %c2_i32_81 = arith.constant 2 : i32
    %241 = tpu.dynamic_rotate %226 by %c2_i32_81 dim 1 : vector<16x128xf32>, i32 -> vector<16x128xf32>
    %242 = vector.broadcast %67 : vector<1x128xf32> to vector<16x128xf32>
    %243 = arith.mulf %241, %242 : vector<16x128xf32>
    %244 = arith.addf %240, %243 : vector<16x128xf32>
    %c1_i32_82 = arith.constant 1 : i32
    %245 = tpu.dynamic_rotate %226 by %c1_i32_82 dim 1 : vector<16x128xf32>, i32 -> vector<16x128xf32>
    %246 = vector.broadcast %79 : vector<1x128xf32> to vector<16x128xf32>
    %247 = arith.mulf %245, %246 : vector<16x128xf32>
    %248 = arith.addf %244, %247 : vector<16x128xf32>
    %c127_i32_83 = arith.constant 127 : i32
    %249 = tpu.dynamic_rotate %226 by %c127_i32_83 dim 1 : vector<16x128xf32>, i32 -> vector<16x128xf32>
    %250 = vector.broadcast %91 : vector<1x128xf32> to vector<16x128xf32>
    %251 = arith.mulf %249, %250 : vector<16x128xf32>
    %252 = arith.addf %248, %251 : vector<16x128xf32>
    %c126_i32_84 = arith.constant 126 : i32
    %253 = tpu.dynamic_rotate %226 by %c126_i32_84 dim 1 : vector<16x128xf32>, i32 -> vector<16x128xf32>
    %254 = vector.broadcast %103 : vector<1x128xf32> to vector<16x128xf32>
    %255 = arith.mulf %253, %254 : vector<16x128xf32>
    %256 = arith.addf %252, %255 : vector<16x128xf32>
    %c125_i32_85 = arith.constant 125 : i32
    %257 = tpu.dynamic_rotate %226 by %c125_i32_85 dim 1 : vector<16x128xf32>, i32 -> vector<16x128xf32>
    %258 = vector.broadcast %115 : vector<1x128xf32> to vector<16x128xf32>
    %259 = arith.mulf %257, %258 : vector<16x128xf32>
    %260 = arith.addf %256, %259 : vector<16x128xf32>
    %c124_i32_86 = arith.constant 124 : i32
    %261 = tpu.dynamic_rotate %226 by %c124_i32_86 dim 1 : vector<16x128xf32>, i32 -> vector<16x128xf32>
    %262 = vector.broadcast %127 : vector<1x128xf32> to vector<16x128xf32>
    %263 = arith.mulf %261, %262 : vector<16x128xf32>
    %264 = arith.addf %260, %263 : vector<16x128xf32>
    %c123_i32_87 = arith.constant 123 : i32
    %265 = tpu.dynamic_rotate %226 by %c123_i32_87 dim 1 : vector<16x128xf32>, i32 -> vector<16x128xf32>
    %266 = vector.broadcast %139 : vector<1x128xf32> to vector<16x128xf32>
    %267 = arith.mulf %265, %266 : vector<16x128xf32>
    %268 = arith.addf %264, %267 : vector<16x128xf32>
    %cst_88 = arith.constant dense<0.000000e+00> : vector<16x128xf32>
    %269 = tpu.matmul %2, %268, %cst_88 {dimension_numbers = #tpu.dot_dimension_numbers<[1], [0], [0], [1], [0, 0, 1, 1], [], []>} : vector<16x16xf32>, vector<16x128xf32>, vector<16x128xf32> -> vector<16x128xf32>
    %270 = arith.mulf %1, %1 : vector<16x128xf32>
    %cst_89 = arith.constant 0.266011745 : f32
    %271 = vector.broadcast %cst_89 : f32 to vector<16x128xf32>
    %272 = arith.mulf %270, %271 : vector<16x128xf32>
    %c5_i32_90 = arith.constant 5 : i32
    %273 = tpu.dynamic_rotate %270 by %c5_i32_90 dim 1 : vector<16x128xf32>, i32 -> vector<16x128xf32>
    %274 = vector.broadcast %31 : vector<1x128xf32> to vector<16x128xf32>
    %275 = arith.mulf %273, %274 : vector<16x128xf32>
    %276 = arith.addf %272, %275 : vector<16x128xf32>
    %c4_i32_91 = arith.constant 4 : i32
    %277 = tpu.dynamic_rotate %270 by %c4_i32_91 dim 1 : vector<16x128xf32>, i32 -> vector<16x128xf32>
    %278 = vector.broadcast %43 : vector<1x128xf32> to vector<16x128xf32>
    %279 = arith.mulf %277, %278 : vector<16x128xf32>
    %280 = arith.addf %276, %279 : vector<16x128xf32>
    %c3_i32_92 = arith.constant 3 : i32
    %281 = tpu.dynamic_rotate %270 by %c3_i32_92 dim 1 : vector<16x128xf32>, i32 -> vector<16x128xf32>
    %282 = vector.broadcast %55 : vector<1x128xf32> to vector<16x128xf32>
    %283 = arith.mulf %281, %282 : vector<16x128xf32>
    %284 = arith.addf %280, %283 : vector<16x128xf32>
    %c2_i32_93 = arith.constant 2 : i32
    %285 = tpu.dynamic_rotate %270 by %c2_i32_93 dim 1 : vector<16x128xf32>, i32 -> vector<16x128xf32>
    %286 = vector.broadcast %67 : vector<1x128xf32> to vector<16x128xf32>
    %287 = arith.mulf %285, %286 : vector<16x128xf32>
    %288 = arith.addf %284, %287 : vector<16x128xf32>
    %c1_i32_94 = arith.constant 1 : i32
    %289 = tpu.dynamic_rotate %270 by %c1_i32_94 dim 1 : vector<16x128xf32>, i32 -> vector<16x128xf32>
    %290 = vector.broadcast %79 : vector<1x128xf32> to vector<16x128xf32>
    %291 = arith.mulf %289, %290 : vector<16x128xf32>
    %292 = arith.addf %288, %291 : vector<16x128xf32>
    %c127_i32_95 = arith.constant 127 : i32
    %293 = tpu.dynamic_rotate %270 by %c127_i32_95 dim 1 : vector<16x128xf32>, i32 -> vector<16x128xf32>
    %294 = vector.broadcast %91 : vector<1x128xf32> to vector<16x128xf32>
    %295 = arith.mulf %293, %294 : vector<16x128xf32>
    %296 = arith.addf %292, %295 : vector<16x128xf32>
    %c126_i32_96 = arith.constant 126 : i32
    %297 = tpu.dynamic_rotate %270 by %c126_i32_96 dim 1 : vector<16x128xf32>, i32 -> vector<16x128xf32>
    %298 = vector.broadcast %103 : vector<1x128xf32> to vector<16x128xf32>
    %299 = arith.mulf %297, %298 : vector<16x128xf32>
    %300 = arith.addf %296, %299 : vector<16x128xf32>
    %c125_i32_97 = arith.constant 125 : i32
    %301 = tpu.dynamic_rotate %270 by %c125_i32_97 dim 1 : vector<16x128xf32>, i32 -> vector<16x128xf32>
    %302 = vector.broadcast %115 : vector<1x128xf32> to vector<16x128xf32>
    %303 = arith.mulf %301, %302 : vector<16x128xf32>
    %304 = arith.addf %300, %303 : vector<16x128xf32>
    %c124_i32_98 = arith.constant 124 : i32
    %305 = tpu.dynamic_rotate %270 by %c124_i32_98 dim 1 : vector<16x128xf32>, i32 -> vector<16x128xf32>
    %306 = vector.broadcast %127 : vector<1x128xf32> to vector<16x128xf32>
    %307 = arith.mulf %305, %306 : vector<16x128xf32>
    %308 = arith.addf %304, %307 : vector<16x128xf32>
    %c123_i32_99 = arith.constant 123 : i32
    %309 = tpu.dynamic_rotate %270 by %c123_i32_99 dim 1 : vector<16x128xf32>, i32 -> vector<16x128xf32>
    %310 = vector.broadcast %139 : vector<1x128xf32> to vector<16x128xf32>
    %311 = arith.mulf %309, %310 : vector<16x128xf32>
    %312 = arith.addf %308, %311 : vector<16x128xf32>
    %cst_100 = arith.constant dense<0.000000e+00> : vector<16x128xf32>
    %313 = tpu.matmul %2, %312, %cst_100 {dimension_numbers = #tpu.dot_dimension_numbers<[1], [0], [0], [1], [0, 0, 1, 1], [], []>} : vector<16x16xf32>, vector<16x128xf32>, vector<16x128xf32> -> vector<16x128xf32>
    %314 = arith.mulf %0, %1 : vector<16x128xf32>
    %cst_101 = arith.constant 0.266011745 : f32
    %315 = vector.broadcast %cst_101 : f32 to vector<16x128xf32>
    %316 = arith.mulf %314, %315 : vector<16x128xf32>
    %c5_i32_102 = arith.constant 5 : i32
    %317 = tpu.dynamic_rotate %314 by %c5_i32_102 dim 1 : vector<16x128xf32>, i32 -> vector<16x128xf32>
    %318 = vector.broadcast %31 : vector<1x128xf32> to vector<16x128xf32>
    %319 = arith.mulf %317, %318 : vector<16x128xf32>
    %320 = arith.addf %316, %319 : vector<16x128xf32>
    %c4_i32_103 = arith.constant 4 : i32
    %321 = tpu.dynamic_rotate %314 by %c4_i32_103 dim 1 : vector<16x128xf32>, i32 -> vector<16x128xf32>
    %322 = vector.broadcast %43 : vector<1x128xf32> to vector<16x128xf32>
    %323 = arith.mulf %321, %322 : vector<16x128xf32>
    %324 = arith.addf %320, %323 : vector<16x128xf32>
    %c3_i32_104 = arith.constant 3 : i32
    %325 = tpu.dynamic_rotate %314 by %c3_i32_104 dim 1 : vector<16x128xf32>, i32 -> vector<16x128xf32>
    %326 = vector.broadcast %55 : vector<1x128xf32> to vector<16x128xf32>
    %327 = arith.mulf %325, %326 : vector<16x128xf32>
    %328 = arith.addf %324, %327 : vector<16x128xf32>
    %c2_i32_105 = arith.constant 2 : i32
    %329 = tpu.dynamic_rotate %314 by %c2_i32_105 dim 1 : vector<16x128xf32>, i32 -> vector<16x128xf32>
    %330 = vector.broadcast %67 : vector<1x128xf32> to vector<16x128xf32>
    %331 = arith.mulf %329, %330 : vector<16x128xf32>
    %332 = arith.addf %328, %331 : vector<16x128xf32>
    %c1_i32_106 = arith.constant 1 : i32
    %333 = tpu.dynamic_rotate %314 by %c1_i32_106 dim 1 : vector<16x128xf32>, i32 -> vector<16x128xf32>
    %334 = vector.broadcast %79 : vector<1x128xf32> to vector<16x128xf32>
    %335 = arith.mulf %333, %334 : vector<16x128xf32>
    %336 = arith.addf %332, %335 : vector<16x128xf32>
    %c127_i32_107 = arith.constant 127 : i32
    %337 = tpu.dynamic_rotate %314 by %c127_i32_107 dim 1 : vector<16x128xf32>, i32 -> vector<16x128xf32>
    %338 = vector.broadcast %91 : vector<1x128xf32> to vector<16x128xf32>
    %339 = arith.mulf %337, %338 : vector<16x128xf32>
    %340 = arith.addf %336, %339 : vector<16x128xf32>
    %c126_i32_108 = arith.constant 126 : i32
    %341 = tpu.dynamic_rotate %314 by %c126_i32_108 dim 1 : vector<16x128xf32>, i32 -> vector<16x128xf32>
    %342 = vector.broadcast %103 : vector<1x128xf32> to vector<16x128xf32>
    %343 = arith.mulf %341, %342 : vector<16x128xf32>
    %344 = arith.addf %340, %343 : vector<16x128xf32>
    %c125_i32_109 = arith.constant 125 : i32
    %345 = tpu.dynamic_rotate %314 by %c125_i32_109 dim 1 : vector<16x128xf32>, i32 -> vector<16x128xf32>
    %346 = vector.broadcast %115 : vector<1x128xf32> to vector<16x128xf32>
    %347 = arith.mulf %345, %346 : vector<16x128xf32>
    %348 = arith.addf %344, %347 : vector<16x128xf32>
    %c124_i32_110 = arith.constant 124 : i32
    %349 = tpu.dynamic_rotate %314 by %c124_i32_110 dim 1 : vector<16x128xf32>, i32 -> vector<16x128xf32>
    %350 = vector.broadcast %127 : vector<1x128xf32> to vector<16x128xf32>
    %351 = arith.mulf %349, %350 : vector<16x128xf32>
    %352 = arith.addf %348, %351 : vector<16x128xf32>
    %c123_i32_111 = arith.constant 123 : i32
    %353 = tpu.dynamic_rotate %314 by %c123_i32_111 dim 1 : vector<16x128xf32>, i32 -> vector<16x128xf32>
    %354 = vector.broadcast %139 : vector<1x128xf32> to vector<16x128xf32>
    %355 = arith.mulf %353, %354 : vector<16x128xf32>
    %356 = arith.addf %352, %355 : vector<16x128xf32>
    %cst_112 = arith.constant dense<0.000000e+00> : vector<16x128xf32>
    %357 = tpu.matmul %2, %356, %cst_112 {dimension_numbers = #tpu.dot_dimension_numbers<[1], [0], [0], [1], [0, 0, 1, 1], [], []>} : vector<16x16xf32>, vector<16x128xf32>, vector<16x128xf32> -> vector<16x128xf32>
    %358 = arith.mulf %182, %182 : vector<16x128xf32>
    %359 = arith.mulf %225, %225 : vector<16x128xf32>
    %360 = arith.mulf %182, %225 : vector<16x128xf32>
    %361 = arith.subf %269, %358 : vector<16x128xf32>
    %362 = arith.subf %313, %359 : vector<16x128xf32>
    %363 = arith.subf %357, %360 : vector<16x128xf32>
    %cst_113 = arith.constant 2.000000e+00 : f32
    %364 = vector.broadcast %cst_113 : f32 to vector<16x128xf32>
    %365 = arith.mulf %364, %360 : vector<16x128xf32>
    %cst_114 = arith.constant 9.99999974E-5 : f32
    %366 = vector.broadcast %cst_114 : f32 to vector<16x128xf32>
    %367 = arith.addf %365, %366 : vector<16x128xf32>
    %cst_115 = arith.constant 2.000000e+00 : f32
    %368 = vector.broadcast %cst_115 : f32 to vector<16x128xf32>
    %369 = arith.mulf %368, %363 : vector<16x128xf32>
    %cst_116 = arith.constant 8.99999984E-4 : f32
    %370 = vector.broadcast %cst_116 : f32 to vector<16x128xf32>
    %371 = arith.addf %369, %370 : vector<16x128xf32>
    %372 = arith.mulf %367, %371 : vector<16x128xf32>
    %373 = arith.addf %358, %359 : vector<16x128xf32>
    %cst_117 = arith.constant 9.99999974E-5 : f32
    %374 = vector.broadcast %cst_117 : f32 to vector<16x128xf32>
    %375 = arith.addf %373, %374 : vector<16x128xf32>
    %376 = arith.addf %361, %362 : vector<16x128xf32>
    %cst_118 = arith.constant 8.99999984E-4 : f32
    %377 = vector.broadcast %cst_118 : f32 to vector<16x128xf32>
    %378 = arith.addf %376, %377 : vector<16x128xf32>
    %379 = arith.mulf %375, %378 : vector<16x128xf32>
    %380 = arith.divf %372, %379 : vector<16x128xf32>
    %381 = vector.shape_cast %380 : vector<16x128xf32> to vector<1x16x128xf32>
    %cst_119 = arith.constant dense<0.000000e+00> : vector<1xf32>
    %382 = vector.multi_reduction <add>, %381, %cst_119 [1, 2] : vector<1x16x128xf32> to vector<1xf32>
    %383 = vector.shape_cast %382 : vector<1xf32> to vector<1x1x1xf32>
    %384 = vector.extract %383[0, 0, 0] : f32 from vector<1x1x1xf32>
    %cst_120 = arith.constant 0.000000e+00 : f32
    %385 = vector.broadcast %cst_120 : f32 to vector<1x8x128xf32>
    %386 = vector.broadcast %384 : f32 to vector<1x8x128xf32>
    %387 = arith.addf %386, %385 : vector<1x8x128xf32>
    %c0_121 = arith.constant 0 : index
    %c0_122 = arith.constant 0 : index
    %c0_123 = arith.constant 0 : index
    %388 = vector.load %arg4[%c0_121, %c0_122, %c0_123] : memref<1x8x128xf32, #tpu.memory_space<vmem>>, vector<1x8x128xf32>
    tpu.vector_store %arg4[%c0_121, %c0_122, %c0_123], %387 {strides = array<i32>} : memref<1x8x128xf32, #tpu.memory_space<vmem>>, vector<1x8x128xf32>,
    return
  }
  func.func @transform_0(%arg0: i32) -> (i32, i32) {
    %c0_i32 = arith.constant 0 : i32
    %c0_i32_0 = arith.constant 0 : i32
    return %c0_i32, %arg0 : i32, i32
  }
  func.func @transform_1(%arg0: i32) -> (i32, i32) {
    %c0_i32 = arith.constant 0 : i32
    %c0_i32_0 = arith.constant 0 : i32
    return %c0_i32, %arg0 : i32, i32
  }
  func.func @transform_2(%arg0: i32) -> (i32, i32) {
    %c0_i32 = arith.constant 0 : i32
    %c0_i32_0 = arith.constant 0 : i32
    %c0_i32_1 = arith.constant 0 : i32
    return %c0_i32, %c0_i32_0 : i32, i32
  }
  func.func @transform_3(%arg0: i32) -> (i32, i32, i32) {
    %c0_i32 = arith.constant 0 : i32
    %c0_i32_0 = arith.constant 0 : i32
    %c0_i32_1 = arith.constant 0 : i32
    return %arg0, %c0_i32, %c0_i32_0 : i32, i32, i32
  }
}

</mosaic_0001>

<bundles_post_ra>
// kernel: tpu_custom_call.1
= control target key start
LH: loop header
LB: loop body
LE: loop exit
PB: predicated region body
PF: predicated region fallthrough
CT: control target
= control target key end

     0   :  { %8 = vsyncpa [#allocation3], 0  ;;  %s1766_s0 = inlined_call_operand.hbm [shape: f32[16,128], index: 0, kind: input, shape index: {}]   ;;  %s1767_s1 = inlined_call_operand.hbm [shape: f32[16,128], index: 1, kind: input, shape index: {}]   ;;  %s1768_s2 = inlined_call_operand.hbm [shape: f32[16,16], index: 2, kind: input, shape index: {}]   ;;  %s1769_s3 = inlined_call_operand.hbm [shape: f32[1,8,128], index: 3, kind: output, shape index: {}]  }
   0x1   :  { %9 = vsyncpa [#allocation6], 0 }
   0x2   :  { %10 = vsyncpa [#allocation4], 0  ;;  %s1191_s12 = smov [#allocation5]   ;;  %s1192_s14 = smov [#allocation2]  }
   0x3   :  { %s28_s13 = sshll.u32 %s1191_s12, 4  ;;  %s16_s15 = sshll.u32 %s1192_s14, 4  ;;  %s29_s13 = int_to_ptr.vmem [resolvable:$true] %s28_s13  ;;  %s1228_s15 = int_to_ptr.vmem [resolvable:$true] %s16_s15 }
   0x4   :  { %s1097_s18 = scalar_lea.hbm %s1767_s1, 256 }
   0x5   :  { %p1098_p0 = scmp.ne.s32.totalorder %s1767_s1, %s1097_s18  ;;  %p1101_p1 = scmp.lt.u32.totalorder %s1097_s18, %s1767_s1 }
   0x7   :  { %p1103_p2 = pnand %p1101_p1, %p1098_p0 }
   0x9   :  { %1106 = shalt.err (!%p1103_p2)
}
   0xa   :  { %s1107_s23 = scalar_lea.vmem %s29_s13, 256  ;;  %p1112_p4 = scmp.lt.s32.totalorder %s29_s13, %s29_s13 }
   0xb   :  { %p1108_p3 = scmp.ne.s32.totalorder %s29_s13, %s1107_s23  ;;  %p1113_p5 = scmp.lt.s32.totalorder %s1107_s23, %s1107_s23 }
   0xd   :  { %p1114_p6 = por %p1113_p5, %p1112_p4 }
   0xf   :  { %p1115_p7 = pnand %p1114_p6, %p1108_p3 }
  0x11   :  { %1118 = shalt.err (!%p1115_p7)
}
  0x12   :  { %s1193_s24 = smov 128   ;;  %s1194_s25 = smov 8  }
  0x13   :  { %34 = dma.hbm_to_vmem [thread:$0]  %s1767_s1, 256, %s29_s13, [#allocation6], %s1193_s24, %s1193_s24, %s1194_s25  }
  0x14   :  { %s1119_s30 = scalar_lea.hbm %s1766_s0, 256 }
  0x15   :  { %p1120_p8 = scmp.ne.s32.totalorder %s1766_s0, %s1119_s30  ;;  %p1123_p9 = scmp.lt.u32.totalorder %s1119_s30, %s1766_s0 }
  0x17   :  { %p1125_p10 = pnand %p1123_p9, %p1120_p8 }
  0x19   :  { %1128 = shalt.err (!%p1125_p10)
}
  0x1a   :  { %s1129_s8 = scalar_lea.vmem %s1228_s15, 256  ;;  %p1134_p12 = scmp.lt.s32.totalorder %s1228_s15, %s1228_s15 }
  0x1b   :  { %p1130_p11 = scmp.ne.s32.totalorder %s1228_s15, %s1129_s8  ;;  %p1135_p13 = scmp.lt.s32.totalorder %s1129_s8, %s1129_s8 }
  0x1d   :  { %p1136_p0 = por %p1135_p13, %p1134_p12 }
  0x1f   :  { %p1137_p1 = pnand %p1136_p0, %p1130_p11 }
  0x21   :  { %1140 = shalt.err (!%p1137_p1)
}
  0x22   :  { %22 = dma.hbm_to_vmem [thread:$0]  %s1766_s0, 256, %s1228_s15, [#allocation3], %s1193_s24, %s1193_s24, %s1194_s25  }
  0x23   :  { %s1195_s10 = smov [#allocation7]   ;;  %s1141_s14 = scalar_lea.hbm %s1768_s2, 256 }
  0x24   :  { %s40_s11 = sshll.u32 %s1195_s10, 4  ;;  %p1142_p2 = scmp.ne.s32.totalorder %s1768_s2, %s1141_s14  ;;  %s41_s11 = int_to_ptr.vmem [resolvable:$true] %s40_s11 }
  0x25   :  { %p1145_p3 = scmp.lt.u32.totalorder %s1141_s14, %s1768_s2 }
  0x27   :  { %p1147_p4 = pnand %p1145_p3, %p1142_p2 }
  0x29   :  { %1150 = shalt.err (!%p1147_p4)
}
  0x2a   :  { %s1151_s20 = scalar_lea.vmem %s41_s11, 256  ;;  %p1156_p6 = scmp.lt.s32.totalorder %s41_s11, %s41_s11 }
  0x2b   :  { %p1152_p5 = scmp.ne.s32.totalorder %s41_s11, %s1151_s20  ;;  %p1157_p7 = scmp.lt.s32.totalorder %s1151_s20, %s1151_s20 }
  0x2d   :  { %p1158_p8 = por %p1157_p7, %p1156_p6 }
  0x2f   :  { %p1159_p9 = pnand %p1158_p8, %p1152_p5 }
  0x31   :  { %1162 = shalt.err (!%p1159_p9)
}
  0x32   :  { %46 = dma.hbm_to_vmem [thread:$0]  %s1768_s2, 256, %s41_s11, [#allocation6], %s1193_s24, %s1193_s24, %s1194_s25  }
  0x33   :  { %1185 = dma.done.wait [#allocation3], 256  }
  0x34   :  { %1186 = vsyncadd [#allocation3], 4294967040 }
  0x35   :  { %1187 = dma.done.wait [#allocation6], 512  }
  0x36   :  { %1188 = vsyncadd [#allocation6], 4294966784  ;;  %v1280_v0 = vld [vmem:[#allocation5] sm:$0xff]  ;;  %v1282_v1 = vld [vmem:[#allocation2] sm:$0xff]  ;;  %s1196_s21 = smov 5   ;;  %s1197_s2 = smov 4   ;;  %v62_v8 = vlaneseq }
  0x37   :  { %292 = vrot.lane.b32.xlu1 %v1280_v0, %s1196_s21  ;;  %128 = vrot.lane.b32.xlu0 %v1282_v1, %s1196_s21  ;;  %v1288_v2 = vld [vmem:[#allocation5 + $0x8] sm:$0xff]  ;;  %v1290_v3 = vld [vmem:[#allocation2 + $0x8] sm:$0xff]  ;;  %s1198_s22 = smov 3   ;;  %v1318_v5 = vmul.f32 %v1282_v1, %v1282_v1  ;;  %v1330_v7 = vmul.f32 %v1280_v0, %v1280_v0  ;;  %s1199_s23 = smov 2   ;;  %v1422_v11 = vmul.f32 %v1280_v0, %v1282_v1  ;;  %v1205_v20 = vmov 0.0  }
  0x38   :  { %v1314_v4 = vmul.f32 %v1290_v3, %v1290_v3  ;;  %v1326_v6 = vmul.f32 %v1288_v2, %v1288_v2  ;;  %s1200_s24 = smov 1   ;;  %s1201_s25 = smov 127   ;;  %v63_v9 = vand.u32 127, %v62_v8  ;;  %v1418_v10 = vmul.f32 %v1288_v2, %v1290_v3 }
  0x39   :  { %s1202_s26 = smov 126   ;;  %s1203_s27 = smov 125   ;;  %v291_v24 = vmul.f32 0.26601174, %v1288_v2  ;;  %v127_v27 = vmul.f32 0.26601174, %v1290_v3 }
  0x3a   :  { %v1424_v12 = vand.u32 15, %v63_v9  ;;  %s1204_s28 = smov 124   ;;  %v126_v29 = vmul.f32 0.26601174, %v1282_v1  ;;  %v290_v39 = vmul.f32 0.26601174, %v1280_v0 }
  0x3b   :  { %294 = vrot.lane.b32.xlu1 %v1288_v2, %s1196_s21  ;;  %130 = vrot.lane.b32.xlu0 %v1290_v3, %s1196_s21  ;;  %s1206_s29 = smov 123   ;;  %vm208_vm5 = vcmask 130048   ;;  %s1207_s30 = smov [#allocation8]  }
  0x3c   :  { %v76_v15 = vadd.s32 4294967291, %v1424_v12  ;;  %v81_v16 = vadd.s32 4294967292, %v1424_v12  ;;  %v86_v19 = vadd.s32 4294967293, %v1424_v12  ;;  %v91_v60 = vadd.s32 4294967294, %v1424_v12  ;;  %s979_s4 = sshll.u32 %s1207_s30, 4  ;;  %s980_s4 = int_to_ptr.vmem [resolvable:$true] %s979_s4 }
  0x3d   :  { %s1163_s6 = scalar_lea.vmem %s980_s4, 128  ;;  %p1168_p11 = scmp.lt.s32.totalorder %s980_s4, %s980_s4 }
  0x3e   :  { %vm77_vm0 = vcmp.ge.s32.totalorder %v76_v15, 0  ;;  %vm82_vm1 = vcmp.ge.s32.totalorder %v81_v16, 0  ;;  %vm87_vm2 = vcmp.ge.s32.totalorder %v86_v19, 0  ;;  %vm92_vm3 = vcmp.ge.s32.totalorder %v91_v60, 0  ;;  %p1164_p10 = scmp.ne.s32.totalorder %s980_s4, %s1163_s6  ;;  %p1169_p12 = scmp.lt.s32.totalorder %s1163_s6, %s1163_s6 }
  0x3f   :  { %138 = vrot.lane.b32.xlu1 %v1290_v3, %s1197_s2  ;;  %136 = vrot.lane.b32.xlu0 %v1282_v1, %s1197_s2  ;;  %v1442_v21 = vsel %vm77_vm0, 0.0010283802, %v1205_v20  ;;  %v1447_v26 = vsel %vm82_vm1, 0.0075987587, %v1205_v20  ;;  %v1465_v38 = vsel %vm87_vm2, 0.036000773, %v1205_v20 }
  0x40   :  { %v450_v15 = vmul.f32 0.26601174, %v1314_v4  ;;  %p1170_p13 = por %p1169_p12, %p1168_p11 }
  0x42   :  { %p1171_p0 = pnand %p1170_p13, %p1164_p10 }
  0x43   :  { %302 = vrot.lane.b32.xlu1 %v1288_v2, %s1197_s2  ;;  %300 = vrot.lane.b32.xlu0 %v1280_v0, %s1197_s2 }
  0x47   :  { %146 = vrot.lane.b32.xlu1 %v1290_v3, %s1198_s22  ;;  %144 = vrot.lane.b32.xlu0 %v1282_v1, %s1198_s22 }
  0x4b   :  { %310 = vrot.lane.b32.xlu1 %v1288_v2, %s1198_s22  ;;  %308 = vrot.lane.b32.xlu0 %v1280_v0, %s1198_s22 }
  0x4f   :  { %453 = vrot.lane.b32.xlu1 %v1314_v4, %s1196_s21  ;;  %451 = vrot.lane.b32.xlu0 %v1318_v5, %s1196_s21 }
  0x53   :  { %612 = vrot.lane.b32.xlu1 %v1326_v6, %s1196_s21  ;;  %610 = vrot.lane.b32.xlu0 %v1330_v7, %s1196_s21 }
  0x57   :  { %154 = vrot.lane.b32.xlu1 %v1290_v3, %s1199_s23  ;;  %152 = vrot.lane.b32.xlu0 %v1282_v1, %s1199_s23 }
  0x5b   :  { %318 = vrot.lane.b32.xlu1 %v1288_v2, %s1199_s23  ;;  %316 = vrot.lane.b32.xlu0 %v1280_v0, %s1199_s23 }
  0x5f   :  { %461 = vrot.lane.b32.xlu1 %v1314_v4, %s1197_s2  ;;  %459 = vrot.lane.b32.xlu0 %v1318_v5, %s1197_s2 }
  0x63   :  { %620 = vrot.lane.b32.xlu1 %v1326_v6, %s1197_s2  ;;  %618 = vrot.lane.b32.xlu0 %v1330_v7, %s1197_s2 }
  0x67   :  { %162 = vrot.lane.b32.xlu1 %v1290_v3, %s1200_s24  ;;  %160 = vrot.lane.b32.xlu0 %v1282_v1, %s1200_s24 }
  0x6b   :  { %326 = vrot.lane.b32.xlu1 %v1288_v2, %s1200_s24  ;;  %324 = vrot.lane.b32.xlu0 %v1280_v0, %s1200_s24 }
  0x6f   :  { %469 = vrot.lane.b32.xlu1 %v1314_v4, %s1198_s22  ;;  %467 = vrot.lane.b32.xlu0 %v1318_v5, %s1198_s22 }
  0x73   :  { %628 = vrot.lane.b32.xlu1 %v1326_v6, %s1198_s22  ;;  %626 = vrot.lane.b32.xlu0 %v1330_v7, %s1198_s22 }
  0x77   :  { %170 = vrot.lane.b32.xlu1 %v1290_v3, %s1201_s25  ;;  %168 = vrot.lane.b32.xlu0 %v1282_v1, %s1201_s25 }
  0x7b   :  { %334 = vrot.lane.b32.xlu1 %v1288_v2, %s1201_s25  ;;  %332 = vrot.lane.b32.xlu0 %v1280_v0, %s1201_s25 }
  0x7f   :  { %477 = vrot.lane.b32.xlu1 %v1314_v4, %s1199_s23  ;;  %475 = vrot.lane.b32.xlu0 %v1318_v5, %s1199_s23 }
  0x83   :  { %636 = vrot.lane.b32.xlu1 %v1326_v6, %s1199_s23  ;;  %634 = vrot.lane.b32.xlu0 %v1330_v7, %s1199_s23 }
  0x87   :  { %178 = vrot.lane.b32.xlu1 %v1290_v3, %s1202_s26  ;;  %176 = vrot.lane.b32.xlu0 %v1282_v1, %s1202_s26 }
  0x8b   :  { %342 = vrot.lane.b32.xlu1 %v1288_v2, %s1202_s26  ;;  %340 = vrot.lane.b32.xlu0 %v1280_v0, %s1202_s26 }
  0x8f   :  { %485 = vrot.lane.b32.xlu1 %v1314_v4, %s1200_s24  ;;  %483 = vrot.lane.b32.xlu0 %v1318_v5, %s1200_s24 }
  0x93   :  { %644 = vrot.lane.b32.xlu1 %v1326_v6, %s1200_s24  ;;  %642 = vrot.lane.b32.xlu0 %v1330_v7, %s1200_s24 }
  0x97   :  { %186 = vrot.lane.b32.xlu1 %v1290_v3, %s1203_s27  ;;  %184 = vrot.lane.b32.xlu0 %v1282_v1, %s1203_s27 }
  0x9b   :  { %350 = vrot.lane.b32.xlu1 %v1288_v2, %s1203_s27  ;;  %348 = vrot.lane.b32.xlu0 %v1280_v0, %s1203_s27 }
  0x9f   :  { %493 = vrot.lane.b32.xlu1 %v1314_v4, %s1201_s25  ;;  %491 = vrot.lane.b32.xlu0 %v1318_v5, %s1201_s25 }
  0xa3   :  { %652 = vrot.lane.b32.xlu1 %v1326_v6, %s1201_s25  ;;  %650 = vrot.lane.b32.xlu0 %v1330_v7, %s1201_s25 }
  0xa7   :  { %771 = vrot.lane.b32.xlu1 %v1418_v10, %s1196_s21  ;;  %769 = vrot.lane.b32.xlu0 %v1422_v11, %s1196_s21 }
  0xa9   :  { %v293_v13 = vpop.permute.xlu1 %292  ;;  %v129_v14 = vpop.permute.xlu0 %128 }
  0xaa   :  { %v132_v30 = vmul.f32 %v129_v14, %v1442_v21  ;;  %v296_v40 = vmul.f32 %v293_v13, %v1442_v21 }
  0xab   :  { %194 = vrot.lane.b32.xlu1 %v1290_v3, %s1204_s28  ;;  %192 = vrot.lane.b32.xlu0 %v1282_v1, %s1204_s28 }
  0xac   :  { %v134_v41 = vadd.f32 %v132_v30, %v126_v29  ;;  %v298_v50 = vadd.f32 %v296_v40, %v290_v39 }
  0xad   :  { %v295_v17 = vpop.permute.xlu1 %294  ;;  %v131_v18 = vpop.permute.xlu0 %130 }
  0xae   :  { %v297_v25 = vmul.f32 %v295_v17, %v1442_v21  ;;  %v133_v28 = vmul.f32 %v131_v18, %v1442_v21  ;;  %v449_v17 = vmul.f32 0.26601174, %v1318_v5 }
  0xaf   :  { %358 = vrot.lane.b32.xlu1 %v1288_v2, %s1204_s28  ;;  %356 = vrot.lane.b32.xlu0 %v1280_v0, %s1204_s28 }
  0xb0   :  { %v299_v34 = vadd.f32 %v297_v25, %v291_v24  ;;  %v135_v37 = vadd.f32 %v133_v28, %v127_v27  ;;  %v96_v28 = vadd.s32 4294967295, %v1424_v12 }
  0xb1   :  { %v139_v22 = vpop.permute.xlu1 %138  ;;  %v137_v23 = vpop.permute.xlu0 %136 }
  0xb2   :  { %v141_v31 = vmul.f32 %v139_v22, %v1447_v26  ;;  %v140_v35 = vmul.f32 %v137_v23, %v1447_v26  ;;  %vm97_vm4 = vcmp.ge.s32.totalorder %v96_v28, 0 }
  0xb3   :  { %501 = vrot.lane.b32.xlu1 %v1314_v4, %s1202_s26  ;;  %499 = vrot.lane.b32.xlu0 %v1318_v5, %s1202_s26 }
  0xb4   :  { %v143_v43 = vadd.f32 %v141_v31, %v135_v37  ;;  %v142_v46 = vadd.f32 %v140_v35, %v134_v41  ;;  %v609_v31 = vmul.f32 0.26601174, %v1326_v6 }
  0xb5   :  { %v303_v32 = vpop.permute.xlu1 %302  ;;  %v301_v33 = vpop.permute.xlu0 %300 }
  0xb6   :  { %v305_v36 = vmul.f32 %v303_v32, %v1447_v26  ;;  %v304_v47 = vmul.f32 %v301_v33, %v1447_v26  ;;  %v608_v32 = vmul.f32 0.26601174, %v1330_v7 }
  0xb7   :  { %660 = vrot.lane.b32.xlu1 %v1326_v6, %s1202_s26  ;;  %658 = vrot.lane.b32.xlu0 %v1330_v7, %s1202_s26 }
  0xb8   :  { %v307_v42 = vadd.f32 %v305_v36, %v299_v34  ;;  %v306_v55 = vadd.f32 %v304_v47, %v298_v50 }
  0xb9   :  { %v147_v44 = vpop.permute.xlu1 %146  ;;  %v145_v45 = vpop.permute.xlu0 %144 }
  0xba   :  { %v149_v48 = vmul.f32 %v147_v44, %v1465_v38  ;;  %v148_v49 = vmul.f32 %v145_v45, %v1465_v38 }
  0xbb   :  { %779 = vrot.lane.b32.xlu1 %v1418_v10, %s1197_s2  ;;  %777 = vrot.lane.b32.xlu0 %v1422_v11, %s1197_s2 }
  0xbc   :  { %v151_v51 = vadd.f32 %v149_v48, %v143_v43  ;;  %v150_v52 = vadd.f32 %v148_v49, %v142_v46  ;;  %v1528_v48 = vsel %vm97_vm4, 0.21300554, %v1205_v20  ;;  %v1530_v49 = vld [vmem:[#allocation7] sm:$0xff] }
  0xbd   :  { %v311_v53 = vpop.permute.xlu1 %310  ;;  %v309_v54 = vpop.permute.xlu0 %308  ;;  %1023 = vmatprep.mubr.msk.f32.mxu0 %vm208_vm5, %v1530_v49  ;;  %1030 = vmatprep.mubr.msk.f32.mxu1 %vm208_vm5, %v1530_v49 }
  0xbe   :  { %v313_v56 = vmul.f32 %v311_v53, %v1465_v38  ;;  %v312_v57 = vmul.f32 %v309_v54, %v1465_v38 }
  0xbf   :  { %202 = vrot.lane.b32.xlu1 %v1290_v3, %s1206_s29  ;;  %200 = vrot.lane.b32.xlu0 %v1282_v1, %s1206_s29  ;;  %v1492_v1 = vsel %vm92_vm3, 0.109360695, %v1205_v20 }
  0xc0   :  { %v315_v58 = vadd.f32 %v313_v56, %v307_v42  ;;  %v314_v59 = vadd.f32 %v312_v57, %v306_v55 }
  0xc1   :  { %v454_v61 = vpop.permute.xlu1 %453  ;;  %v452_v62 = vpop.permute.xlu0 %451 }
  0xc2   :  { %v456_v16 = vmul.f32 %v454_v61, %v1442_v21  ;;  %v455_v18 = vmul.f32 %v452_v62, %v1442_v21 }
  0xc3   :  { %366 = vrot.lane.b32.xlu1 %v1288_v2, %s1206_s29  ;;  %364 = vrot.lane.b32.xlu0 %v1280_v0, %s1206_s29 }
  0xc4   :  { %v458_v29 = vadd.f32 %v456_v16, %v450_v15  ;;  %v457_v30 = vadd.f32 %v455_v18, %v449_v17 }
  0xc5   :  { %v613_v63 = vpop.permute.xlu1 %612  ;;  %v611_v8 = vpop.permute.xlu0 %610 }
  0xc6   :  { %v615_v35 = vmul.f32 %v613_v63, %v1442_v21  ;;  %v614_v36 = vmul.f32 %v611_v8, %v1442_v21  ;;  %v101_v8 = vadd.s32 1, %v1424_v12 }
  0xc7   :  { %509 = vrot.lane.b32.xlu1 %v1314_v4, %s1203_s27  ;;  %507 = vrot.lane.b32.xlu0 %v1318_v5, %s1203_s27 }
  0xc8   :  { %v617_v44 = vadd.f32 %v615_v35, %v609_v31  ;;  %v616_v45 = vadd.f32 %v614_v36, %v608_v32  ;;  %vm103_vm6 = vcmp.lt.s32.totalorder %v101_v8, 16 }
  0xc9   :  { %v155_v3 = vpop.permute.xlu1 %154  ;;  %v153_v9 = vpop.permute.xlu0 %152 }
  0xca   :  { %v157_v13 = vmul.f32 %v155_v3, %v1492_v1  ;;  %v156_v2 = vmul.f32 %v153_v9, %v1492_v1 }
  0xcb   :  { %668 = vrot.lane.b32.xlu1 %v1326_v6, %s1203_s27  ;;  %666 = vrot.lane.b32.xlu0 %v1330_v7, %s1203_s27 }
  0xcc   :  { %v159_v0 = vadd.f32 %v157_v13, %v151_v51  ;;  %v158_v14 = vadd.f32 %v156_v2, %v150_v52 }
  0xcd   :  { %v319_v19 = vpop.permute.xlu1 %318  ;;  %v317_v22 = vpop.permute.xlu0 %316 }
  0xce   :  { %v321_v23 = vmul.f32 %v319_v19, %v1492_v1  ;;  %v320_v24 = vmul.f32 %v317_v22, %v1492_v1 }
  0xcf   :  { %787 = vrot.lane.b32.xlu1 %v1418_v10, %s1198_s22  ;;  %785 = vrot.lane.b32.xlu0 %v1422_v11, %s1198_s22 }
  0xd0   :  { %v323_v25 = vadd.f32 %v321_v23, %v315_v58  ;;  %v322_v27 = vadd.f32 %v320_v24, %v314_v59 }
  0xd1   :  { %v462_v33 = vpop.permute.xlu1 %461  ;;  %v460_v34 = vpop.permute.xlu0 %459 }
  0xd2   :  { %v464_v37 = vmul.f32 %v462_v33, %v1447_v26  ;;  %v463_v39 = vmul.f32 %v460_v34, %v1447_v26 }
  0xd3   :  { %517 = vrot.lane.b32.xlu1 %v1314_v4, %s1204_s28  ;;  %515 = vrot.lane.b32.xlu0 %v1318_v5, %s1204_s28 }
  0xd4   :  { %v466_v40 = vadd.f32 %v464_v37, %v458_v29  ;;  %v465_v41 = vadd.f32 %v463_v39, %v457_v30 }
  0xd5   :  { %v621_v42 = vpop.permute.xlu1 %620  ;;  %v619_v43 = vpop.permute.xlu0 %618 }
  0xd6   :  { %v623_v46 = vmul.f32 %v621_v42, %v1447_v26  ;;  %v622_v47 = vmul.f32 %v619_v43, %v1447_v26 }
  0xd7   :  { %676 = vrot.lane.b32.xlu1 %v1326_v6, %s1204_s28  ;;  %674 = vrot.lane.b32.xlu0 %v1330_v7, %s1204_s28 }
  0xd8   :  { %v625_v50 = vadd.f32 %v623_v46, %v617_v44  ;;  %v624_v51 = vadd.f32 %v622_v47, %v616_v45 }
  0xd9   :  { %v163_v52 = vpop.permute.xlu1 %162  ;;  %v161_v53 = vpop.permute.xlu0 %160 }
  0xda   :  { %v165_v54 = vmul.f32 %v163_v52, %v1528_v48  ;;  %v164_v55 = vmul.f32 %v161_v53, %v1528_v48 }
  0xdb   :  { %795 = vrot.lane.b32.xlu1 %v1418_v10, %s1199_s23  ;;  %793 = vrot.lane.b32.xlu0 %v1422_v11, %s1199_s23 }
  0xdc   :  { %v167_v56 = vadd.f32 %v165_v54, %v159_v0  ;;  %v166_v57 = vadd.f32 %v164_v55, %v158_v14 }
  0xdd   :  { %v327_v58 = vpop.permute.xlu1 %326  ;;  %v325_v59 = vpop.permute.xlu0 %324 }
  0xde   :  { %v329_v60 = vmul.f32 %v327_v58, %v1528_v48  ;;  %v328_v61 = vmul.f32 %v325_v59, %v1528_v48 }
  0xdf   :  { %525 = vrot.lane.b32.xlu1 %v1314_v4, %s1206_s29  ;;  %523 = vrot.lane.b32.xlu0 %v1318_v5, %s1206_s29 }
  0xe0   :  { %v331_v62 = vadd.f32 %v329_v60, %v323_v25  ;;  %v330_v63 = vadd.f32 %v328_v61, %v322_v27 }
  0xe1   :  { %v470_v3 = vpop.permute.xlu1 %469  ;;  %v468_v9 = vpop.permute.xlu0 %467 }
  0xe2   :  { %v472_v13 = vmul.f32 %v470_v3, %v1465_v38  ;;  %v471_v2 = vmul.f32 %v468_v9, %v1465_v38 }
  0xe3   :  { %684 = vrot.lane.b32.xlu1 %v1326_v6, %s1206_s29  ;;  %682 = vrot.lane.b32.xlu0 %v1330_v7, %s1206_s29  ;;  %v1562_v6 = vsel %vm103_vm6, 0.21300554, %v1205_v20 }
  0xe4   :  { %v474_v4 = vadd.f32 %v472_v13, %v466_v40  ;;  %v473_v0 = vadd.f32 %v471_v2, %v465_v41 }
  0xe5   :  { %v629_v5 = vpop.permute.xlu1 %628  ;;  %v627_v14 = vpop.permute.xlu0 %626 }
  0xe6   :  { %v631_v15 = vmul.f32 %v629_v5, %v1465_v38  ;;  %v630_v16 = vmul.f32 %v627_v14, %v1465_v38 }
  0xe7   :  { %803 = vrot.lane.b32.xlu1 %v1418_v10, %s1200_s24  ;;  %801 = vrot.lane.b32.xlu0 %v1422_v11, %s1200_s24 }
  0xe8   :  { %v633_v17 = vadd.f32 %v631_v15, %v625_v50  ;;  %v632_v7 = vadd.f32 %v630_v16, %v624_v51 }
  0xe9   :  { %v171_v18 = vpop.permute.xlu1 %170  ;;  %v169_v19 = vpop.permute.xlu0 %168 }
  0xea   :  { %v173_v22 = vmul.f32 %v171_v18, %v1562_v6  ;;  %v172_v23 = vmul.f32 %v169_v19, %v1562_v6  ;;  %v111_v18 = vadd.s32 3, %v1424_v12 }
  0xeb   :  { %811 = vrot.lane.b32.xlu1 %v1418_v10, %s1201_s25  ;;  %809 = vrot.lane.b32.xlu0 %v1422_v11, %s1201_s25 }
  0xec   :  { %v1570_v24 = vadd.f32 %v173_v22, %v167_v56  ;;  %v1572_v25 = vadd.f32 %v172_v23, %v166_v57  ;;  %v116_v23 = vadd.s32 4, %v1424_v12  ;;  %vm113_vm8 = vcmp.lt.s32.totalorder %v111_v18, 16 }
  0xed   :  { %v335_v27 = vpop.permute.xlu1 %334  ;;  %v333_v28 = vpop.permute.xlu0 %332 }
  0xee   :  { %v337_v29 = vmul.f32 %v335_v27, %v1562_v6  ;;  %v336_v30 = vmul.f32 %v333_v28, %v1562_v6  ;;  %vm118_vm9 = vcmp.lt.s32.totalorder %v116_v23, 16 }
  0xef   :  { %819 = vrot.lane.b32.xlu1 %v1418_v10, %s1202_s26  ;;  %817 = vrot.lane.b32.xlu0 %v1422_v11, %s1202_s26 }
  0xf0   :  { %v1580_v31 = vadd.f32 %v337_v29, %v331_v62  ;;  %v1582_v32 = vadd.f32 %v336_v30, %v330_v63  ;;  %v1635_v30 = vsel %vm113_vm8, 0.036000773, %v1205_v20 }
  0xf1   :  { %v478_v33 = vpop.permute.xlu1 %477  ;;  %v476_v34 = vpop.permute.xlu0 %475 }
  0xf2   :  { %v480_v35 = vmul.f32 %v478_v33, %v1492_v1  ;;  %v479_v36 = vmul.f32 %v476_v34, %v1492_v1  ;;  %v121_v33 = vadd.s32 5, %v1424_v12 }
  0xf3   :  { %827 = vrot.lane.b32.xlu1 %v1418_v10, %s1203_s27  ;;  %825 = vrot.lane.b32.xlu0 %v1422_v11, %s1203_s27 }
  0xf4   :  { %v482_v37 = vadd.f32 %v480_v35, %v474_v4  ;;  %v481_v39 = vadd.f32 %v479_v36, %v473_v0  ;;  %vm123_vm10 = vcmp.lt.s32.totalorder %v121_v33, 16 }
  0xf5   :  { %v637_v40 = vpop.permute.xlu1 %636  ;;  %v635_v41 = vpop.permute.xlu0 %634 }
  0xf6   :  { %v639_v42 = vmul.f32 %v637_v40, %v1492_v1  ;;  %v638_v43 = vmul.f32 %v635_v41, %v1492_v1 }
  0xf7   :  { %835 = vrot.lane.b32.xlu1 %v1418_v10, %s1204_s28  ;;  %833 = vrot.lane.b32.xlu0 %v1422_v11, %s1204_s28 }
  0xf8   :  { %v641_v44 = vadd.f32 %v639_v42, %v633_v17  ;;  %v640_v45 = vadd.f32 %v638_v43, %v632_v7  ;;  %v106_v7 = vadd.s32 2, %v1424_v12 }
  0xf9   :  { %v179_v46 = vpop.permute.xlu1 %178  ;;  %v177_v47 = vpop.permute.xlu0 %176 }
  0xfa   :  { %vm108_vm7 = vcmp.lt.s32.totalorder %v106_v7, 16 }
  0xfb   :  { %843 = vrot.lane.b32.xlu1 %v1418_v10, %s1206_s29  ;;  %841 = vrot.lane.b32.xlu0 %v1422_v11, %s1206_s29  ;;  %v1632_v29 = vsel %vm108_vm7, 0.109360695, %v1205_v20 }
  0xfc   :  { %v181_v34 = vmul.f32 %v179_v46, %v1632_v29 }
  0xfd   :  { %v343_v50 = vpop.permute.xlu1 %342  ;;  %v341_v51 = vpop.permute.xlu0 %340 }
  0xfe   :  { %v183_v42 = vadd.f32 %v181_v34, %v1570_v24  ;;  %v345_v12 = vmul.f32 %v343_v50, %v1632_v29  ;;  %v344_v43 = vmul.f32 %v341_v51, %v1632_v29 }
 0x100   :  { %v347_v51 = vadd.f32 %v345_v12, %v1580_v31 }
 0x101   :  { %v486_v52 = vpop.permute.xlu1 %485  ;;  %v484_v53 = vpop.permute.xlu0 %483 }
 0x102   :  { %v488_v54 = vmul.f32 %v486_v52, %v1528_v48  ;;  %v487_v55 = vmul.f32 %v484_v53, %v1528_v48 }
 0x104   :  { %v1602_v56 = vadd.f32 %v488_v54, %v482_v37  ;;  %v1604_v57 = vadd.f32 %v487_v55, %v481_v39  ;;  %v180_v37 = vmul.f32 %v177_v47, %v1632_v29  ;;  %v1645_v39 = vsel %vm118_vm9, 0.0075987587, %v1205_v20 }
 0x105   :  { %v645_v58 = vpop.permute.xlu1 %644  ;;  %v643_v59 = vpop.permute.xlu0 %642  ;;  %v1661_v55 = vsel %vm123_vm10, 0.0010283802, %v1205_v20 }
 0x106   :  { %v647_v60 = vmul.f32 %v645_v58, %v1528_v48  ;;  %v646_v61 = vmul.f32 %v643_v59, %v1528_v48  ;;  %v182_v47 = vadd.f32 %v180_v37, %v1572_v25  ;;  %v346_v58 = vadd.f32 %v344_v43, %v1582_v32 }
 0x108   :  { %v1608_v62 = vadd.f32 %v647_v60, %v641_v44  ;;  %v1610_v63 = vadd.f32 %v646_v61, %v640_v45 }
 0x109   :  { %v187_v8 = vpop.permute.xlu1 %186  ;;  %v185_v3 = vpop.permute.xlu0 %184 }
 0x10a   :  { %v189_v40 = vmul.f32 %v187_v8, %v1635_v30  ;;  %v188_v41 = vmul.f32 %v185_v3, %v1635_v30 }
 0x10c   :  { %v191_v53 = vadd.f32 %v189_v40, %v183_v42  ;;  %v190_v24 = vadd.f32 %v188_v41, %v182_v47  ;;  %v1672_v42 = vld [vmem:[#allocation7 + $0x8] sm:$0xff] }
 0x10d   :  { %v351_v9 = vpop.permute.xlu1 %350  ;;  %v349_v13 = vpop.permute.xlu0 %348 }
 0x10e   :  { %v353_v54 = vmul.f32 %v351_v9, %v1635_v30  ;;  %v352_v50 = vmul.f32 %v349_v13, %v1635_v30 }
 0x111   :  { %v1612_v2 = vpop.permute.xlu1 %493  ;;  %v1614_v4 = vpop.permute.xlu0 %491 }
 0x115   :  { %v1616_v0 = vpop.permute.xlu1 %652  ;;  %v1618_v5 = vpop.permute.xlu0 %650 }
 0x119   :  { %v1620_v14 = vpop.permute.xlu1 %771  ;;  %v1622_v15 = vpop.permute.xlu0 %769 }
 0x11d   :  { %v195_v16 = vpop.permute.xlu1 %194  ;;  %v193_v17 = vpop.permute.xlu0 %192 }
 0x11e   :  { %v197_v44 = vmul.f32 %v195_v16, %v1645_v39  ;;  %v196_v52 = vmul.f32 %v193_v17, %v1645_v39  ;;  %v355_v16 = vadd.f32 %v353_v54, %v347_v51  ;;  %v354_v17 = vadd.f32 %v352_v50, %v346_v58 }
 0x11f   :  { %v495_v50 = vmul.f32 %v1614_v4, %v1562_v6 }
 0x120   :  { %v199_v59 = vadd.f32 %v197_v44, %v191_v53  ;;  %v198_v8 = vadd.f32 %v196_v52, %v190_v24  ;;  %v496_v24 = vmul.f32 %v1612_v2, %v1562_v6 }
 0x121   :  { %v359_v19 = vpop.permute.xlu1 %358  ;;  %v357_v22 = vpop.permute.xlu0 %356  ;;  %v497_v4 = vadd.f32 %v495_v50, %v1604_v57 }
 0x122   :  { %v361_v60 = vmul.f32 %v359_v19, %v1645_v39  ;;  %v360_v3 = vmul.f32 %v357_v22, %v1645_v39 }
 0x124   :  { %v363_v18 = vadd.f32 %v361_v60, %v355_v16  ;;  %v362_v32 = vadd.f32 %v360_v3, %v354_v17 }
 0x125   :  { %v1627_v27 = vpop.permute.xlu1 %501  ;;  %v1629_v28 = vpop.permute.xlu0 %499 }
 0x126   :  { %v504_v51 = vmul.f32 %v1627_v27, %v1632_v29  ;;  %v503_v60 = vmul.f32 %v1629_v28, %v1632_v29 }
 0x128   :  { %v505_v16 = vadd.f32 %v503_v60, %v497_v4  ;;  %v773_v4 = vmul.f32 %v1622_v15, %v1442_v21 }
 0x129   :  { %v1639_v35 = vpop.permute.xlu1 %660  ;;  %v1641_v36 = vpop.permute.xlu0 %658 }
 0x12a   :  { %v662_v28 = vmul.f32 %v1641_v36, %v1632_v29 }
 0x12d   :  { %v1653_v45 = vpop.permute.xlu1 %779  ;;  %v1655_v46 = vpop.permute.xlu0 %777 }
 0x131   :  { %v203_v61 = vpop.permute.xlu1 %202  ;;  %v201_v25 = vpop.permute.xlu0 %200 }
 0x132   :  { %v205_v9 = vmul.f32 %v203_v61, %v1661_v55  ;;  %v204_v20 = vmul.f32 %v201_v25, %v1661_v55  ;;  %v498_v61 = vadd.f32 %v496_v24, %v1602_v56  ;;  %v655_v25 = vmul.f32 %v1616_v0, %v1562_v6 }
 0x134   :  { %v207_v7 = vadd.f32 %v205_v9, %v199_v59  ;;  %v206_v13 = vadd.f32 %v204_v20, %v198_v8  ;;  %v654_v8 = vmul.f32 %v1618_v5, %v1562_v6  ;;  %v506_v27 = vadd.f32 %v504_v51, %v498_v61 }
 0x135   :  { %v367_v31 = vpop.permute.xlu1 %366  ;;  %v365_v23 = vpop.permute.xlu0 %364  ;;  %v663_v9 = vmul.f32 %v1639_v35, %v1632_v29  ;;  %v657_v17 = vadd.f32 %v655_v25, %v1608_v62 }
 0x136   :  { %v369_v33 = vmul.f32 %v367_v31, %v1661_v55  ;;  %v368_v19 = vmul.f32 %v365_v23, %v1661_v55  ;;  %v1054_v34 = vpack.c.bf16 %v207_v7, %v206_v13  ;;  %v656_v57 = vadd.f32 %v654_v8, %v1610_v63 }
 0x137   :  { %v665_v31 = vadd.f32 %v663_v9, %v657_v17  ;;  %v774_v8 = vmul.f32 %v1620_v14, %v1442_v21  ;;  %v781_v9 = vmul.f32 %v1655_v46, %v1447_v26 }
 0x138   :  { %v371_v37 = vadd.f32 %v369_v33, %v363_v18  ;;  %v370_v40 = vadd.f32 %v368_v19, %v362_v32  ;;  %1055 = vmatprep.subr.bf16.mxu0 %v1054_v34  ;;  %v664_v23 = vadd.f32 %v662_v28, %v656_v57 }
 0x139   :  { %v510_v22 = vpop.permute.xlu1 %509  ;;  %v508_v41 = vpop.permute.xlu0 %507  ;;  %1057 = vmatpush3.bf16.msra.mxu0 %v1054_v34 }
 0x13a   :  { %v1058_v12 = vpack.c.bf16 %v371_v37, %v370_v40  ;;  %v512_v2 = vmul.f32 %v510_v22, %v1635_v30  ;;  %v511_v3 = vmul.f32 %v508_v41, %v1635_v30 }
 0x13c   :  { %1059 = vmatprep.subr.bf16.mxu1 %v1058_v12  ;;  %1024 = vmatmul.mubr.msk.f32.vlgmr.msra.gmra.mrb[0].mxu0 %vm208_vm5, %v1672_v42  ;;  %v514_v7 = vadd.f32 %v512_v2, %v506_v27  ;;  %v513_v18 = vadd.f32 %v511_v3, %v505_v16  ;;  %v767_v2 = vmul.f32 0.26601174, %v1422_v11  ;;  %v782_v27 = vmul.f32 %v1653_v45, %v1447_v26 }
 0x13d   :  { %v669_v43 = vpop.permute.xlu1 %668  ;;  %1061 = vmatpush3.bf16.msra.mxu1 %v1058_v12  ;;  %v667_v44 = vpop.permute.xlu0 %666  ;;  %1037 = vmatprep.mubr.msk.f32.mxu0 %vm208_vm5, %v1530_v49 }
 0x13e   :  { %v671_v13 = vmul.f32 %v669_v43, %v1635_v30  ;;  %v670_v35 = vmul.f32 %v667_v44, %v1635_v30  ;;  %v775_v14 = vadd.f32 %v773_v4, %v767_v2 }
 0x140   :  { %1031 = vmatmul.mubr.msk.f32.vlgmr.msra.gmra.mrb[0].mxu1 %vm208_vm5, %v1672_v42  ;;  %v673_v40 = vadd.f32 %v671_v13, %v665_v31  ;;  %v672_v22 = vadd.f32 %v670_v35, %v664_v23  ;;  %v783_v26 = vadd.f32 %v781_v9, %v775_v14 }
 0x141   :  { %v1680_v47 = vpop.permute.xlu1 %787  ;;  %v1682_v52 = vpop.permute.xlu0 %785  ;;  %1044 = vmatprep.mubr.msk.f32.mxu1 %vm208_vm5, %v1530_v49 }
 0x142   :  { %v790_v21 = vmul.f32 %v1680_v47, %v1465_v38  ;;  %v789_v15 = vmul.f32 %v1682_v52, %v1465_v38 }
 0x144   :  { %v791_v17 = vadd.f32 %v789_v15, %v783_v26 }
 0x145   :  { %v518_v53 = vpop.permute.xlu1 %517  ;;  %v516_v54 = vpop.permute.xlu0 %515 }
 0x146   :  { %v520_v56 = vmul.f32 %v518_v53, %v1645_v39  ;;  %v519_v5 = vmul.f32 %v516_v54, %v1645_v39 }
 0x148   :  { %v522_v36 = vadd.f32 %v520_v56, %v514_v7  ;;  %v521_v34 = vadd.f32 %v519_v5, %v513_v18 }
 0x149   :  { %v677_v58 = vpop.permute.xlu1 %676  ;;  %v675_v59 = vpop.permute.xlu0 %674 }
 0x14a   :  { %v679_v32 = vmul.f32 %v677_v58, %v1645_v39  ;;  %v678_v37 = vmul.f32 %v675_v59, %v1645_v39  ;;  %v768_v59 = vmul.f32 0.26601174, %v1418_v10 }
 0x14c   :  { %v681_v43 = vadd.f32 %v679_v32, %v673_v40  ;;  %v680_v54 = vadd.f32 %v678_v37, %v672_v22  ;;  %v776_v11 = vadd.f32 %v774_v8, %v768_v59 }
 0x14d   :  { %v796_v20 = vpop.permute.xlu1 %795  ;;  %v794_v0 = vpop.permute.xlu0 %793 }
 0x14e   :  { %v784_v45 = vadd.f32 %v782_v27, %v776_v11  ;;  %v798_v46 = vmul.f32 %v796_v20, %v1492_v1  ;;  %v797_v56 = vmul.f32 %v794_v0, %v1492_v1 }
 0x150   :  { %v799_v13 = vadd.f32 %v797_v56, %v791_v17 }
 0x151   :  { %v526_v33 = vpop.permute.xlu1 %525  ;;  %v524_v19 = vpop.permute.xlu0 %523 }
 0x152   :  { %v528_v62 = vmul.f32 %v526_v33, %v1661_v55  ;;  %v527_v63 = vmul.f32 %v524_v19, %v1661_v55 }
 0x154   :  { %v530_v41 = vadd.f32 %v528_v62, %v522_v36  ;;  %v529_v12 = vadd.f32 %v527_v63, %v521_v34 }
 0x155   :  { %v685_v44 = vpop.permute.xlu1 %684  ;;  %v683_v53 = vpop.permute.xlu0 %682 }
 0x156   :  { %v687_v24 = vmul.f32 %v685_v44, %v1661_v55  ;;  %v686_v50 = vmul.f32 %v683_v53, %v1661_v55  ;;  %v1062_v51 = vpack.c.bf16 %v530_v41, %v529_v12 }
 0x158   :  { %v689_v58 = vadd.f32 %v687_v24, %v681_v43  ;;  %v688_v60 = vadd.f32 %v686_v50, %v680_v54  ;;  %1063 = vmatprep.subr.bf16.mxu0 %v1062_v51 }
 0x159   :  { %v804_v61 = vpop.permute.xlu1 %803  ;;  %v802_v25 = vpop.permute.xlu0 %801  ;;  %1065 = vmatpush3.bf16.msra.mxu0 %v1062_v51 }
 0x15a   :  { %v1066_v3 = vpack.c.bf16 %v689_v58, %v688_v60  ;;  %v806_v57 = vmul.f32 %v804_v61, %v1528_v48  ;;  %v805_v47 = vmul.f32 %v802_v25, %v1528_v48 }
 0x15c   :  { %1067 = vmatprep.subr.bf16.mxu1 %v1066_v3  ;;  %1038 = vmatmul.mubr.msk.f32.vlgmr.msra.gmra.mrb[2].mxu0 %vm208_vm5, %v1672_v42  ;;  %v807_v0 = vadd.f32 %v805_v47, %v799_v13 }
 0x15d   :  { %v812_v10 = vpop.permute.xlu1 %811  ;;  %1069 = vmatpush3.bf16.msra.mxu1 %v1066_v3  ;;  %v810_v28 = vpop.permute.xlu0 %809  ;;  %1051 = vmatprep.mubr.msk.f32.mxu0 %vm208_vm5, %v1530_v49  ;;  %v792_v49 = vadd.f32 %v790_v21, %v784_v45 }
 0x15e   :  { %v814_v38 = vmul.f32 %v812_v10, %v1562_v6  ;;  %v813_v52 = vmul.f32 %v810_v28, %v1562_v6 }
 0x15f   :  { %v800_v7 = vadd.f32 %v798_v46, %v792_v49 }
 0x160   :  { %1045 = vmatmul.mubr.msk.f32.vlgmr.msra.gmra.mrb[2].mxu1 %vm208_vm5, %v1672_v42  ;;  %v815_v36 = vadd.f32 %v813_v52, %v807_v0 }
 0x161   :  { %v820_v16 = vpop.permute.xlu1 %819  ;;  %v818_v5 = vpop.permute.xlu0 %817  ;;  %v808_v1 = vadd.f32 %v806_v57, %v800_v7 }
 0x162   :  { %v822_v35 = vmul.f32 %v820_v16, %v1632_v29  ;;  %v821_v31 = vmul.f32 %v818_v5, %v1632_v29 }
 0x163   :  { %v816_v23 = vadd.f32 %v814_v38, %v808_v1 }
 0x164   :  { %v823_v37 = vadd.f32 %v821_v31, %v815_v36 }
 0x165   :  { %v828_v20 = vpop.permute.xlu1 %827  ;;  %v826_v18 = vpop.permute.xlu0 %825  ;;  %v824_v34 = vadd.f32 %v822_v35, %v816_v23 }
 0x166   :  { %v830_v32 = vmul.f32 %v828_v20, %v1635_v30  ;;  %v829_v48 = vmul.f32 %v826_v18, %v1635_v30 }
 0x168   :  { %v832_v63 = vadd.f32 %v830_v32, %v824_v34  ;;  %v831_v40 = vadd.f32 %v829_v48, %v823_v37 }
 0x169   :  { %v836_v33 = vpop.permute.xlu1 %835  ;;  %v834_v19 = vpop.permute.xlu0 %833 }
 0x16a   :  { %v838_v6 = vmul.f32 %v836_v33, %v1645_v39  ;;  %v837_v62 = vmul.f32 %v834_v19, %v1645_v39 }
 0x16c   :  { %v840_v12 = vadd.f32 %v838_v6, %v832_v63  ;;  %v839_v29 = vadd.f32 %v837_v62, %v831_v40 }
 0x16d   :  { %v844_v22 = vpop.permute.xlu1 %843  ;;  %v842_v41 = vpop.permute.xlu0 %841 }
 0x16e   :  { %v846_v43 = vmul.f32 %v844_v22, %v1661_v55  ;;  %v845_v44 = vmul.f32 %v842_v41, %v1661_v55 }
 0x170   :  { %v848_v53 = vadd.f32 %v846_v43, %v840_v12  ;;  %v847_v30 = vadd.f32 %v845_v44, %v839_v29 }
 0x172   :  { %v1070_v54 = vpack.c.bf16 %v848_v53, %v847_v30 }
 0x174   :  { %1071 = vmatprep.subr.bf16.mxu0 %v1070_v54 }
 0x175   :  { %1073 = vmatpush3.bf16.msra.mxu0 %v1070_v54 }
 0x178   :  { %1052 = vmatmul.mubr.msk.f32.vlgmr.msra.gmra.mrb[4].mxu0 %vm208_vm5, %v1672_v42 }
 0x20f   :  { %v1025_v24 = vpop.f32.mrb[0].mxu0 }
 0x210   :  { %v281_v39 = vpop.f32.mrb[1].mxu0  ;;  %v925_v51 = vmul.f32 %v1025_v24, %v1025_v24 }
 0x211   :  { %v924_v61 = vmul.f32 %v281_v39, %v281_v39 }
 0x213   :  { %v1032_v50 = vpop.f32.mrb[0].mxu1 }
 0x214   :  { %v927_v58 = vmul.f32 %v1032_v50, %v1032_v50  ;;  %v929_v60 = vmul.f32 %v1032_v50, %v1025_v24  ;;  %v438_v59 = vpop.f32.mrb[1].mxu1 }
 0x215   :  { %v926_v25 = vmul.f32 %v438_v59, %v438_v59  ;;  %v928_v8 = vmul.f32 %v438_v59, %v281_v39 }
 0x216   :  { %v947_v2 = vadd.f32 %v927_v58, %v925_v51  ;;  %v937_v49 = vmul.f32 2.0, %v929_v60 }
 0x217   :  { %v946_v55 = vadd.f32 %v926_v25, %v924_v61  ;;  %v936_v47 = vmul.f32 2.0, %v928_v8 }
 0x218   :  { %v949_v14 = vadd.f32 0.0001, %v947_v2  ;;  %v939_v52 = vadd.f32 0.0001, %v937_v49 }
 0x219   :  { %v948_v15 = vadd.f32 0.0001, %v946_v55  ;;  %v938_v18 = vadd.f32 0.0001, %v936_v47 }
 0x22f   :  { %v1039_v4 = vpop.f32.mrb[2].mxu0 }
 0x230   :  { %v931_v3 = vsub.f32 %v1039_v4, %v925_v51  ;;  %v597_v27 = vpop.f32.mrb[3].mxu0 }
 0x231   :  { %v930_v9 = vsub.f32 %v597_v27, %v924_v61 }
 0x233   :  { %v1046_v10 = vpop.f32.mrb[2].mxu1 }
 0x234   :  { %v933_v28 = vsub.f32 %v1046_v10, %v927_v58  ;;  %v756_v11 = vpop.f32.mrb[3].mxu1 }
 0x235   :  { %v932_v42 = vsub.f32 %v756_v11, %v926_v25 }
 0x236   :  { %v951_v21 = vadd.f32 %v933_v28, %v931_v3 }
 0x237   :  { %v950_v45 = vadd.f32 %v932_v42, %v930_v9 }
 0x238   :  { %v953_v26 = vadd.f32 0.0009, %v951_v21 }
 0x239   :  { %v952_v46 = vadd.f32 0.0009, %v950_v45 }
 0x23a   :  { %v955_v56 = vmul.f32 %v953_v26, %v949_v14 }
 0x23b   :  { %v954_v16 = vmul.f32 %v952_v46, %v948_v15 }
 0x23c   :  { %1093 = vrcp.f32 %v955_v56 }
 0x23d   :  { %1095 = vrcp.f32 %v954_v16 }
 0x246   :  { %v1094_v35 = vpop.eup %1093 }
 0x247   :  { %v1096_v23 = vpop.eup %1095 }
 0x24b   :  { %v1053_v5 = vpop.f32.mrb[4].mxu0 }
 0x24c   :  { %v935_v17 = vsub.f32 %v1053_v5, %v929_v60  ;;  %v915_v57 = vpop.f32.mrb[5].mxu0 }
 0x24d   :  { %v934_v7 = vsub.f32 %v915_v57, %v928_v8 }
 0x24e   :  { %v941_v13 = vmul.f32 2.0, %v935_v17 }
 0x24f   :  { %v940_v38 = vmul.f32 2.0, %v934_v7 }
 0x250   :  { %v943_v20 = vadd.f32 0.0009, %v941_v13 }
 0x251   :  { %v942_v1 = vadd.f32 0.0009, %v940_v38 }
 0x252   :  { %v945_v0 = vmul.f32 %v943_v20, %v939_v52 }
 0x253   :  { %v944_v31 = vmul.f32 %v942_v1, %v938_v18 }
 0x254   :  { %v959_v36 = vmul.f32 %v1094_v35, %v945_v0 }
 0x255   :  { %v957_v32 = vmul.f32 %v1096_v23, %v944_v31 }
 0x257   :  { %v960_v48 = vadd.f32 %v959_v36, %v957_v32 }
 0x259   :  { %961 = vadd.xlane.f32.xlu0 %v960_v48 }
 0x2e6   :  { %v962_v33 = vpop.xlane.xlu0 %961 }
 0x2e7   :  { %v963_v19 = vrot.slane %v962_v33, 4 }
 0x2e9   :  { %v964_v34 = vadd.f32 %v963_v19, %v962_v33 }
 0x2eb   :  { %v965_v37 = vrot.slane %v964_v34, 2 }
 0x2ed   :  { %v966_v6 = vadd.f32 %v965_v37, %v964_v34 }
 0x2ef   :  { %v967_v62 = vrot.slane %v966_v6, 1 }
 0x2f1   :  { %v968_v63 = vadd.f32 %v967_v62, %v966_v6 }
 0x2f3   :  { %1074 = vpush %v968_v63 }
 0x324   :  { %s1075_s5 = spop %1074 }
 0x325   :  { %v970_v40 = vstv %s1075_s5 }
 0x326   :  { %972 = vst [vmem:[#allocation8] sm:$0xff] %v970_v40 }
 0x327   :  { %1174 = shalt.err (!%p1171_p0)
}
 0x328   :  { %s1175_s1 = scalar_lea.hbm %s1769_s3, 128 }
 0x329   :  { %p1176_p1 = scmp.ne.s32.totalorder %s1769_s3, %s1175_s1  ;;  %p1179_p2 = scmp.lt.u32.totalorder %s1175_s1, %s1769_s3 }
 0x32b   :  { %p1181_p3 = pnand %p1179_p2, %p1176_p1 }
 0x32d   :  { %1184 = shalt.err (!%p1181_p3)
}
 0x32e   :  { %982 = dma.vmem_to_hbm [thread:$0]  %s980_s4, 128, %s1769_s3, [#allocation4]  }
 0x32f   :  { %1189 = dma.done.wait [#allocation4], 128  }
 0x330   :  { %1190 = vsyncadd [#allocation4], 4294967168 }
 0x331   :  { %986 = vsyncpa [#allocation3], 1 }
 0x332   :  { %987 = vsyncpa [#allocation6], 1 }
 0x333   :  { %988 = vsyncpa [#allocation4], 1 }

</bundles_post_ra>
